<compile_context>
chip_gen: v7x
topology: tpu7x:2x2x1
jax: 0.10.0
libtpu: 0.0.40
codegen_flags: <defaults>
</compile_context>

<pallas_src>
import functools

import jax
import jax.numpy as jnp
from jax import lax
from jax.experimental import pallas as pl
from jax.experimental.pallas import tpu as pltpu

# ---------------- hyperparameters (small, consistent with the module) ----------------
B = 2            # batch
SRC_LEN = 8      # source sequence length
TRG_LEN = 8      # target sequence length
EMB = 16         # embedding dim
HID = 32         # LSTM hidden dim  (4*HID = 128 -> lane aligned)
SRC_VOCAB = 32
TRG_VOCAB = 32   # decoder.fc_out.out_features
VOCAB_PAD = 128  # lane-dense padding for logits / one-hot tokens


# ---------------- shared LSTM-cell math (used inside the fused kernel) ----------------
def _lstm_cell(x, h, c, wih, whh, b):
    gates = (jnp.dot(x, wih, preferred_element_type=jnp.float32)
             + jnp.dot(h, whh, preferred_element_type=jnp.float32)
             + b)                              # [B, 4*HID] -> one 128-lane row
    sig = jax.nn.sigmoid(gates)                # full-width EUP pass
    tnh = jnp.tanh(gates)                      # full-width EUP pass
    i = sig[:, 0 * HID:1 * HID]
    f = sig[:, 1 * HID:2 * HID]
    g = tnh[:, 2 * HID:3 * HID]
    o = sig[:, 3 * HID:4 * HID]
    c_new = f * c + i * g
    h_new = o * jnp.tanh(c_new)
    return h_new, c_new


# ---------------- single fused kernel: encoder LSTM + teacher-forced decoder ----------------
def seq2seq_kernel(tf_ref,                       # SMEM [TRG_LEN] int32 (scalar prefetch)
                   src_emb_ref,                  # [SRC_LEN, B, EMB]
                   enc_wih_ref, enc_whh_ref, enc_b_ref,
                   dec_emb_ref,                  # [VOCAB_PAD, EMB] (rows >= TRG_VOCAB are 0)
                   dec_wih_ref, dec_whh_ref, dec_b_ref,
                   dec_wout_ref, dec_bout_ref,   # [HID, VOCAB_PAD], [1, VOCAB_PAD]
                   trg_oh_ref,                   # [TRG_LEN, B, VOCAB_PAD] one-hot targets
                   out_ref):                     # [TRG_LEN, B, VOCAB_PAD]
    # ---- load all weights once (everything fits trivially in VMEM) ----
    enc_wih = enc_wih_ref[...]
    enc_whh = enc_whh_ref[...]
    enc_b = enc_b_ref[...]
    dec_emb = dec_emb_ref[...]
    dec_wih = dec_wih_ref[...]
    dec_whh = dec_whh_ref[...]
    dec_b = dec_b_ref[...]
    dec_wout = dec_wout_ref[...]
    dec_bout = dec_bout_ref[...]

    # ---- encoder: fully unrolled LSTM over the source sequence ----
    h = jnp.zeros((B, HID), jnp.float32)
    c = jnp.zeros((B, HID), jnp.float32)
    for t in range(SRC_LEN):
        x = src_emb_ref[t]                       # [B, EMB]
        h, c = _lstm_cell(x, h, c, enc_wih, enc_whh, enc_b)

    # ---- decoder: fully unrolled teacher-forced loop ----
    out_ref[0] = jnp.zeros((B, VOCAB_PAD), jnp.float32)   # outputs[:, 0] stays zero

    col_i = lax.broadcasted_iota(jnp.int32, (B, VOCAB_PAD), 1)
    col_f = col_i.astype(jnp.float32)
    valid = col_i < TRG_VOCAB                    # mask off padded vocab lanes
    neg_big = jnp.float32(-1e30)
    pad_idx = jnp.float32(VOCAB_PAD)

    tok_oh = trg_oh_ref[0]                       # one-hot of trg[:, 0]
    for t in range(1, TRG_LEN):
        x = jnp.dot(tok_oh, dec_emb, preferred_element_type=jnp.float32)  # embedding via MXU
        h, c = _lstm_cell(x, h, c, dec_wih, dec_whh, dec_b)
        logits = jnp.dot(h, dec_wout, preferred_element_type=jnp.float32) + dec_bout
        out_ref[t] = logits                      # lane-dense 128-wide store

        # argmax over the real vocab (lowest-index tie-break, matches torch/jnp.argmax)
        masked = jnp.where(valid, logits, neg_big)
        row_max = jnp.max(masked, axis=-1, keepdims=True)
        cand = jnp.where(masked == row_max, col_f, pad_idx)
        top1 = jnp.min(cand, axis=-1, keepdims=True)       # [B, 1] float index
        top1_oh = (col_f == top1).astype(jnp.float32)       # exactly-one-hot

        # teacher forcing: blend between ground-truth one-hot and argmax one-hot
        tf = (tf_ref[t] != 0).astype(jnp.float32)
        tok_oh = tf * trg_oh_ref[t] + (1.0 - tf) * top1_oh


def _full_spec(shape):
    n = len(shape)
    return pl.BlockSpec(shape, lambda i, tf, n=n: (0,) * n)


def _seq2seq_call(tf_flags, src_emb_t, enc_wih, enc_whh, enc_b,
                  dec_emb_pad, dec_wih, dec_whh, dec_b,
                  dec_wout_pad, dec_bout_pad, trg_oh_t):
    return pl.pallas_call(
        seq2seq_kernel,
        out_shape=jax.ShapeDtypeStruct((TRG_LEN, B, VOCAB_PAD), jnp.float32),
        grid_spec=pltpu.PrefetchScalarGridSpec(
            num_scalar_prefetch=1,               # teacher-forcing flags -> SMEM
            grid=(1,),
            in_specs=[
                _full_spec((SRC_LEN, B, EMB)),
                _full_spec((EMB, 4 * HID)),
                _full_spec((HID, 4 * HID)),
                _full_spec((1, 4 * HID)),
                _full_spec((VOCAB_PAD, EMB)),
                _full_spec((EMB, 4 * HID)),
                _full_spec((HID, 4 * HID)),
                _full_spec((1, 4 * HID)),
                _full_spec((HID, VOCAB_PAD)),
                _full_spec((1, VOCAB_PAD)),
                _full_spec((TRG_LEN, B, VOCAB_PAD)),
            ],
            out_specs=_full_spec((TRG_LEN, B, VOCAB_PAD)),
        ),
        compiler_params=pltpu.CompilerParams(
            dimension_semantics=("arbitrary",)),
    )(tf_flags, src_emb_t, enc_wih, enc_whh, enc_b,
      dec_emb_pad, dec_wih, dec_whh, dec_b,
      dec_wout_pad, dec_bout_pad, trg_oh_t)


# ---------------- Seq2Seq.forward equivalent ----------------
@functools.partial(jax.jit, static_argnames=("teacher_forcing_ratio",))
def seq2seq_forward(params, src, trg, key, teacher_forcing_ratio=0.5):
    # encoder embedding lookup: one tiny XLA gather, done once per call
    src_emb_t = jnp.transpose(params["enc_emb"][src], (1, 0, 2))   # [SRC_LEN, B, EMB]

    # per-step teacher-forcing coin flips (index t is the flag for decode step t)
    # TODO(synk): torch.rand(1) per step has no in-kernel equivalent; flags are
    # drawn once here with jax.random and consumed from SMEM inside the kernel.
    tf_flags = (jax.random.uniform(key, (TRG_LEN,))
                < teacher_forcing_ratio).astype(jnp.int32)

    # target tokens as lane-dense one-hots, time-major
    trg_oh_t = jax.nn.one_hot(jnp.transpose(trg, (1, 0)), VOCAB_PAD,
                              dtype=jnp.float32)                   # [TRG_LEN, B, 128]

    # pad decoder vocab-sized operands to 128 lanes once (lane-dense MXU / stores)
    dec_emb_pad = jnp.zeros((VOCAB_PAD, EMB), jnp.float32).at[:TRG_VOCAB].set(
        params["dec_emb"])
    dec_wout_pad = jnp.zeros((HID, VOCAB_PAD), jnp.float32).at[:, :TRG_VOCAB].set(
        params["dec_wout"])
    dec_bout_pad = jnp.zeros((1, VOCAB_PAD), jnp.float32).at[:, :TRG_VOCAB].set(
        params["dec_bout"])

    out_pad = _seq2seq_call(tf_flags, src_emb_t,
                            params["enc_wih"], params["enc_whh"], params["enc_b"],
                            dec_emb_pad,
                            params["dec_wih"], params["dec_whh"], params["dec_b"],
                            dec_wout_pad, dec_bout_pad, trg_oh_t)

    # [TRG_LEN, B, 128] -> [B, TRG_LEN, TRG_VOCAB]; row t=0 stays all-zero like the reference
    return jnp.transpose(out_pad[:, :, :TRG_VOCAB], (1, 0, 2))


# ---------------- deterministic parameter init ----------------
def init_params(key):
    ks = jax.random.split(key, 9)
    s = 0.1
    return {
        "enc_emb":  s * jax.random.normal(ks[0], (SRC_VOCAB, EMB), jnp.float32),
        "enc_wih":  s * jax.random.normal(ks[1], (EMB, 4 * HID), jnp.float32),
        "enc_whh":  s * jax.random.normal(ks[2], (HID, 4 * HID), jnp.float32),
        "enc_b":    s * jax.random.normal(ks[3], (1, 4 * HID), jnp.float32),
        "dec_emb":  s * jax.random.normal(ks[4], (TRG_VOCAB, EMB), jnp.float32),
        "dec_wih":  s * jax.random.normal(ks[5], (EMB, 4 * HID), jnp.float32),
        "dec_whh":  s * jax.random.normal(ks[6], (HID, 4 * HID), jnp.float32),
        "dec_b":    s * jax.random.normal(ks[7], (1, 4 * HID), jnp.float32),
        "dec_wout": s * jax.random.normal(ks[8], (HID, TRG_VOCAB), jnp.float32),
        "dec_bout": jnp.zeros((1, TRG_VOCAB), jnp.float32),
    }


if __name__ == "__main__":
    root = jax.random.PRNGKey(0)
    k_param, k_src, k_trg, k_tf = jax.random.split(root, 4)

    params = init_params(k_param)
    src = jax.random.randint(k_src, (B, SRC_LEN), 0, SRC_VOCAB, dtype=jnp.int32)
    trg = jax.random.randint(k_trg, (B, TRG_LEN), 0, TRG_VOCAB, dtype=jnp.int32)

    outputs = seq2seq_forward(params, src, trg, k_tf, teacher_forcing_ratio=0.5)
    outputs = jax.block_until_ready(outputs)

    assert outputs.shape == (B, TRG_LEN, TRG_VOCAB)
    assert outputs.dtype == jnp.float32
    print("KERNEL_OK")
</pallas_src>

<mosaic_0001>
module attributes {stable_mosaic.version = 11 : i64} {
  func.func @seq2seq_kernel(%arg0: i32, %arg1: memref<8xi32, #tpu.memory_space<smem>>, %arg2: memref<8x2x16xf32, #tpu.memory_space<vmem>>, %arg3: memref<16x128xf32, #tpu.memory_space<vmem>>, %arg4: memref<32x128xf32, #tpu.memory_space<vmem>>, %arg5: memref<1x128xf32, #tpu.memory_space<vmem>>, %arg6: memref<128x16xf32, #tpu.memory_space<vmem>>, %arg7: memref<16x128xf32, #tpu.memory_space<vmem>>, %arg8: memref<32x128xf32, #tpu.memory_space<vmem>>, %arg9: memref<1x128xf32, #tpu.memory_space<vmem>>, %arg10: memref<32x128xf32, #tpu.memory_space<vmem>>, %arg11: memref<1x128xf32, #tpu.memory_space<vmem>>, %arg12: memref<8x2x128xf32, #tpu.memory_space<vmem>>, %arg13: memref<8x2x128xf32, #tpu.memory_space<vmem>>) attributes {dimension_semantics = [#tpu.dimension_semantics<arbitrary>], iteration_bounds = array<i64: 1>, scalar_prefetch = 1 : i64, scratch_operands = 0 : i64, tpu.core_type = #tpu.core_type<tc>, window_params = [{pipeline_mode = #tpu.pipeline_mode<synchronous>, transform_indices = @transform_0, window_bounds = array<i64: 8, 2, 16>}, {pipeline_mode = #tpu.pipeline_mode<synchronous>, transform_indices = @transform_1, window_bounds = array<i64: 16, 128>}, {pipeline_mode = #tpu.pipeline_mode<synchronous>, transform_indices = @transform_2, window_bounds = array<i64: 32, 128>}, {pipeline_mode = #tpu.pipeline_mode<synchronous>, transform_indices = @transform_3, window_bounds = array<i64: 1, 128>}, {pipeline_mode = #tpu.pipeline_mode<synchronous>, transform_indices = @transform_4, window_bounds = array<i64: 128, 16>}, {pipeline_mode = #tpu.pipeline_mode<synchronous>, transform_indices = @transform_5, window_bounds = array<i64: 16, 128>}, {pipeline_mode = #tpu.pipeline_mode<synchronous>, transform_indices = @transform_6, window_bounds = array<i64: 32, 128>}, {pipeline_mode = #tpu.pipeline_mode<synchronous>, transform_indices = @transform_7, window_bounds = array<i64: 1, 128>}, {pipeline_mode = #tpu.pipeline_mode<synchronous>, transform_indices = @transform_8, window_bounds = array<i64: 32, 128>}, {pipeline_mode = #tpu.pipeline_mode<synchronous>, transform_indices = @transform_9, window_bounds = array<i64: 1, 128>}, {pipeline_mode = #tpu.pipeline_mode<synchronous>, transform_indices = @transform_10, window_bounds = array<i64: 8, 2, 128>}, {pipeline_mode = #tpu.pipeline_mode<synchronous>, transform_indices = @transform_11, window_bounds = array<i64: 8, 2, 128>}]} {
    %c0 = arith.constant 0 : index
    %c0_0 = arith.constant 0 : index
    %0 = vector.load %arg3[%c0, %c0_0] : memref<16x128xf32, #tpu.memory_space<vmem>>, vector<16x128xf32>
    %c0_1 = arith.constant 0 : index
    %c0_2 = arith.constant 0 : index
    %1 = vector.load %arg4[%c0_1, %c0_2] : memref<32x128xf32, #tpu.memory_space<vmem>>, vector<32x128xf32>
    %c0_3 = arith.constant 0 : index
    %c0_4 = arith.constant 0 : index
    %2 = vector.load %arg5[%c0_3, %c0_4] : memref<1x128xf32, #tpu.memory_space<vmem>>, vector<1x128xf32>
    %c0_5 = arith.constant 0 : index
    %c0_6 = arith.constant 0 : index
    %3 = vector.load %arg6[%c0_5, %c0_6] : memref<128x16xf32, #tpu.memory_space<vmem>>, vector<128x16xf32>
    %c0_7 = arith.constant 0 : index
    %c0_8 = arith.constant 0 : index
    %4 = vector.load %arg7[%c0_7, %c0_8] : memref<16x128xf32, #tpu.memory_space<vmem>>, vector<16x128xf32>
    %c0_9 = arith.constant 0 : index
    %c0_10 = arith.constant 0 : index
    %5 = vector.load %arg8[%c0_9, %c0_10] : memref<32x128xf32, #tpu.memory_space<vmem>>, vector<32x128xf32>
    %c0_11 = arith.constant 0 : index
    %c0_12 = arith.constant 0 : index
    %6 = vector.load %arg9[%c0_11, %c0_12] : memref<1x128xf32, #tpu.memory_space<vmem>>, vector<1x128xf32>
    %c0_13 = arith.constant 0 : index
    %c0_14 = arith.constant 0 : index
    %7 = vector.load %arg10[%c0_13, %c0_14] : memref<32x128xf32, #tpu.memory_space<vmem>>, vector<32x128xf32>
    %c0_15 = arith.constant 0 : index
    %c0_16 = arith.constant 0 : index
    %8 = vector.load %arg11[%c0_15, %c0_16] : memref<1x128xf32, #tpu.memory_space<vmem>>, vector<1x128xf32>
    %cst = arith.constant 0.000000e+00 : f32
    %9 = vector.broadcast %cst : f32 to vector<2x32xf32>
    %cst_17 = arith.constant 0.000000e+00 : f32
    %10 = vector.broadcast %cst_17 : f32 to vector<2x32xf32>
    %c0_18 = arith.constant 0 : index
    %c0_19 = arith.constant 0 : index
    %c0_20 = arith.constant 0 : index
    %11 = vector.load %arg2[%c0_18, %c0_19, %c0_20] : memref<8x2x16xf32, #tpu.memory_space<vmem>>, vector<1x2x16xf32>
    %12 = vector.shape_cast %11 : vector<1x2x16xf32> to vector<2x16xf32>
    %cst_21 = arith.constant dense<0.000000e+00> : vector<2x128xf32>
    %13 = tpu.matmul %12, %0, %cst_21 {dimension_numbers = #tpu.dot_dimension_numbers<[1], [0], [0], [1], [0, 0, 1, 1], [], []>} : vector<2x16xf32>, vector<16x128xf32>, vector<2x128xf32> -> vector<2x128xf32>
    %cst_22 = arith.constant dense<0.000000e+00> : vector<2x128xf32>
    %14 = tpu.matmul %9, %1, %cst_22 {dimension_numbers = #tpu.dot_dimension_numbers<[1], [0], [0], [1], [0, 0, 1, 1], [], []>} : vector<2x32xf32>, vector<32x128xf32>, vector<2x128xf32> -> vector<2x128xf32>
    %15 = arith.addf %13, %14 : vector<2x128xf32>
    %16 = vector.broadcast %2 : vector<1x128xf32> to vector<2x128xf32>
    %17 = arith.addf %15, %16 : vector<2x128xf32>
    %18 = arith.negf %17 : vector<2x128xf32>
    %19 = math.exp %18 : vector<2x128xf32>
    %cst_23 = arith.constant 1.000000e+00 : f32
    %20 = vector.broadcast %cst_23 : f32 to vector<2x128xf32>
    %21 = arith.addf %20, %19 : vector<2x128xf32>
    %22 = arith.divf %20, %21 : vector<2x128xf32>
    %23 = math.tanh %17 : vector<2x128xf32>
    %24 = vector.extract_strided_slice %22 {offsets = [0, 0], sizes = [2, 32], strides = [1, 1]} : vector<2x128xf32> to vector<2x32xf32>
    %25 = vector.extract_strided_slice %22 {offsets = [0, 32], sizes = [2, 32], strides = [1, 1]} : vector<2x128xf32> to vector<2x32xf32>
    %26 = vector.extract_strided_slice %23 {offsets = [0, 64], sizes = [2, 32], strides = [1, 1]} : vector<2x128xf32> to vector<2x32xf32>
    %27 = vector.extract_strided_slice %22 {offsets = [0, 96], sizes = [2, 32], strides = [1, 1]} : vector<2x128xf32> to vector<2x32xf32>
    %28 = arith.mulf %25, %10 : vector<2x32xf32>
    %29 = arith.mulf %24, %26 : vector<2x32xf32>
    %30 = arith.addf %28, %29 : vector<2x32xf32>
    %31 = math.tanh %30 : vector<2x32xf32>
    %32 = arith.mulf %27, %31 : vector<2x32xf32>
    %c1 = arith.constant 1 : index
    %c0_24 = arith.constant 0 : index
    %c0_25 = arith.constant 0 : index
    %33 = vector.load %arg2[%c1, %c0_24, %c0_25] : memref<8x2x16xf32, #tpu.memory_space<vmem>>, vector<1x2x16xf32>
    %34 = vector.shape_cast %33 : vector<1x2x16xf32> to vector<2x16xf32>
    %cst_26 = arith.constant dense<0.000000e+00> : vector<2x128xf32>
    %35 = tpu.matmul %34, %0, %cst_26 {dimension_numbers = #tpu.dot_dimension_numbers<[1], [0], [0], [1], [0, 0, 1, 1], [], []>} : vector<2x16xf32>, vector<16x128xf32>, vector<2x128xf32> -> vector<2x128xf32>
    %cst_27 = arith.constant dense<0.000000e+00> : vector<2x128xf32>
    %36 = tpu.matmul %32, %1, %cst_27 {dimension_numbers = #tpu.dot_dimension_numbers<[1], [0], [0], [1], [0, 0, 1, 1], [], []>} : vector<2x32xf32>, vector<32x128xf32>, vector<2x128xf32> -> vector<2x128xf32>
    %37 = arith.addf %35, %36 : vector<2x128xf32>
    %38 = vector.broadcast %2 : vector<1x128xf32> to vector<2x128xf32>
    %39 = arith.addf %37, %38 : vector<2x128xf32>
    %40 = arith.negf %39 : vector<2x128xf32>
    %41 = math.exp %40 : vector<2x128xf32>
    %cst_28 = arith.constant 1.000000e+00 : f32
    %42 = vector.broadcast %cst_28 : f32 to vector<2x128xf32>
    %43 = arith.addf %42, %41 : vector<2x128xf32>
    %44 = arith.divf %42, %43 : vector<2x128xf32>
    %45 = math.tanh %39 : vector<2x128xf32>
    %46 = vector.extract_strided_slice %44 {offsets = [0, 0], sizes = [2, 32], strides = [1, 1]} : vector<2x128xf32> to vector<2x32xf32>
    %47 = vector.extract_strided_slice %44 {offsets = [0, 32], sizes = [2, 32], strides = [1, 1]} : vector<2x128xf32> to vector<2x32xf32>
    %48 = vector.extract_strided_slice %45 {offsets = [0, 64], sizes = [2, 32], strides = [1, 1]} : vector<2x128xf32> to vector<2x32xf32>
    %49 = vector.extract_strided_slice %44 {offsets = [0, 96], sizes = [2, 32], strides = [1, 1]} : vector<2x128xf32> to vector<2x32xf32>
    %50 = arith.mulf %47, %30 : vector<2x32xf32>
    %51 = arith.mulf %46, %48 : vector<2x32xf32>
    %52 = arith.addf %50, %51 : vector<2x32xf32>
    %53 = math.tanh %52 : vector<2x32xf32>
    %54 = arith.mulf %49, %53 : vector<2x32xf32>
    %c2 = arith.constant 2 : index
    %c0_29 = arith.constant 0 : index
    %c0_30 = arith.constant 0 : index
    %55 = vector.load %arg2[%c2, %c0_29, %c0_30] : memref<8x2x16xf32, #tpu.memory_space<vmem>>, vector<1x2x16xf32>
    %56 = vector.shape_cast %55 : vector<1x2x16xf32> to vector<2x16xf32>
    %cst_31 = arith.constant dense<0.000000e+00> : vector<2x128xf32>
    %57 = tpu.matmul %56, %0, %cst_31 {dimension_numbers = #tpu.dot_dimension_numbers<[1], [0], [0], [1], [0, 0, 1, 1], [], []>} : vector<2x16xf32>, vector<16x128xf32>, vector<2x128xf32> -> vector<2x128xf32>
    %cst_32 = arith.constant dense<0.000000e+00> : vector<2x128xf32>
    %58 = tpu.matmul %54, %1, %cst_32 {dimension_numbers = #tpu.dot_dimension_numbers<[1], [0], [0], [1], [0, 0, 1, 1], [], []>} : vector<2x32xf32>, vector<32x128xf32>, vector<2x128xf32> -> vector<2x128xf32>
    %59 = arith.addf %57, %58 : vector<2x128xf32>
    %60 = vector.broadcast %2 : vector<1x128xf32> to vector<2x128xf32>
    %61 = arith.addf %59, %60 : vector<2x128xf32>
    %62 = arith.negf %61 : vector<2x128xf32>
    %63 = math.exp %62 : vector<2x128xf32>
    %cst_33 = arith.constant 1.000000e+00 : f32
    %64 = vector.broadcast %cst_33 : f32 to vector<2x128xf32>
    %65 = arith.addf %64, %63 : vector<2x128xf32>
    %66 = arith.divf %64, %65 : vector<2x128xf32>
    %67 = math.tanh %61 : vector<2x128xf32>
    %68 = vector.extract_strided_slice %66 {offsets = [0, 0], sizes = [2, 32], strides = [1, 1]} : vector<2x128xf32> to vector<2x32xf32>
    %69 = vector.extract_strided_slice %66 {offsets = [0, 32], sizes = [2, 32], strides = [1, 1]} : vector<2x128xf32> to vector<2x32xf32>
    %70 = vector.extract_strided_slice %67 {offsets = [0, 64], sizes = [2, 32], strides = [1, 1]} : vector<2x128xf32> to vector<2x32xf32>
    %71 = vector.extract_strided_slice %66 {offsets = [0, 96], sizes = [2, 32], strides = [1, 1]} : vector<2x128xf32> to vector<2x32xf32>
    %72 = arith.mulf %69, %52 : vector<2x32xf32>
    %73 = arith.mulf %68, %70 : vector<2x32xf32>
    %74 = arith.addf %72, %73 : vector<2x32xf32>
    %75 = math.tanh %74 : vector<2x32xf32>
    %76 = arith.mulf %71, %75 : vector<2x32xf32>
    %c3 = arith.constant 3 : index
    %c0_34 = arith.constant 0 : index
    %c0_35 = arith.constant 0 : index
    %77 = vector.load %arg2[%c3, %c0_34, %c0_35] : memref<8x2x16xf32, #tpu.memory_space<vmem>>, vector<1x2x16xf32>
    %78 = vector.shape_cast %77 : vector<1x2x16xf32> to vector<2x16xf32>
    %cst_36 = arith.constant dense<0.000000e+00> : vector<2x128xf32>
    %79 = tpu.matmul %78, %0, %cst_36 {dimension_numbers = #tpu.dot_dimension_numbers<[1], [0], [0], [1], [0, 0, 1, 1], [], []>} : vector<2x16xf32>, vector<16x128xf32>, vector<2x128xf32> -> vector<2x128xf32>
    %cst_37 = arith.constant dense<0.000000e+00> : vector<2x128xf32>
    %80 = tpu.matmul %76, %1, %cst_37 {dimension_numbers = #tpu.dot_dimension_numbers<[1], [0], [0], [1], [0, 0, 1, 1], [], []>} : vector<2x32xf32>, vector<32x128xf32>, vector<2x128xf32> -> vector<2x128xf32>
    %81 = arith.addf %79, %80 : vector<2x128xf32>
    %82 = vector.broadcast %2 : vector<1x128xf32> to vector<2x128xf32>
    %83 = arith.addf %81, %82 : vector<2x128xf32>
    %84 = arith.negf %83 : vector<2x128xf32>
    %85 = math.exp %84 : vector<2x128xf32>
    %cst_38 = arith.constant 1.000000e+00 : f32
    %86 = vector.broadcast %cst_38 : f32 to vector<2x128xf32>
    %87 = arith.addf %86, %85 : vector<2x128xf32>
    %88 = arith.divf %86, %87 : vector<2x128xf32>
    %89 = math.tanh %83 : vector<2x128xf32>
    %90 = vector.extract_strided_slice %88 {offsets = [0, 0], sizes = [2, 32], strides = [1, 1]} : vector<2x128xf32> to vector<2x32xf32>
    %91 = vector.extract_strided_slice %88 {offsets = [0, 32], sizes = [2, 32], strides = [1, 1]} : vector<2x128xf32> to vector<2x32xf32>
    %92 = vector.extract_strided_slice %89 {offsets = [0, 64], sizes = [2, 32], strides = [1, 1]} : vector<2x128xf32> to vector<2x32xf32>
    %93 = vector.extract_strided_slice %88 {offsets = [0, 96], sizes = [2, 32], strides = [1, 1]} : vector<2x128xf32> to vector<2x32xf32>
    %94 = arith.mulf %91, %74 : vector<2x32xf32>
    %95 = arith.mulf %90, %92 : vector<2x32xf32>
    %96 = arith.addf %94, %95 : vector<2x32xf32>
    %97 = math.tanh %96 : vector<2x32xf32>
    %98 = arith.mulf %93, %97 : vector<2x32xf32>
    %c4 = arith.constant 4 : index
    %c0_39 = arith.constant 0 : index
    %c0_40 = arith.constant 0 : index
    %99 = vector.load %arg2[%c4, %c0_39, %c0_40] : memref<8x2x16xf32, #tpu.memory_space<vmem>>, vector<1x2x16xf32>
    %100 = vector.shape_cast %99 : vector<1x2x16xf32> to vector<2x16xf32>
    %cst_41 = arith.constant dense<0.000000e+00> : vector<2x128xf32>
    %101 = tpu.matmul %100, %0, %cst_41 {dimension_numbers = #tpu.dot_dimension_numbers<[1], [0], [0], [1], [0, 0, 1, 1], [], []>} : vector<2x16xf32>, vector<16x128xf32>, vector<2x128xf32> -> vector<2x128xf32>
    %cst_42 = arith.constant dense<0.000000e+00> : vector<2x128xf32>
    %102 = tpu.matmul %98, %1, %cst_42 {dimension_numbers = #tpu.dot_dimension_numbers<[1], [0], [0], [1], [0, 0, 1, 1], [], []>} : vector<2x32xf32>, vector<32x128xf32>, vector<2x128xf32> -> vector<2x128xf32>
    %103 = arith.addf %101, %102 : vector<2x128xf32>
    %104 = vector.broadcast %2 : vector<1x128xf32> to vector<2x128xf32>
    %105 = arith.addf %103, %104 : vector<2x128xf32>
    %106 = arith.negf %105 : vector<2x128xf32>
    %107 = math.exp %106 : vector<2x128xf32>
    %cst_43 = arith.constant 1.000000e+00 : f32
    %108 = vector.broadcast %cst_43 : f32 to vector<2x128xf32>
    %109 = arith.addf %108, %107 : vector<2x128xf32>
    %110 = arith.divf %108, %109 : vector<2x128xf32>
    %111 = math.tanh %105 : vector<2x128xf32>
    %112 = vector.extract_strided_slice %110 {offsets = [0, 0], sizes = [2, 32], strides = [1, 1]} : vector<2x128xf32> to vector<2x32xf32>
    %113 = vector.extract_strided_slice %110 {offsets = [0, 32], sizes = [2, 32], strides = [1, 1]} : vector<2x128xf32> to vector<2x32xf32>
    %114 = vector.extract_strided_slice %111 {offsets = [0, 64], sizes = [2, 32], strides = [1, 1]} : vector<2x128xf32> to vector<2x32xf32>
    %115 = vector.extract_strided_slice %110 {offsets = [0, 96], sizes = [2, 32], strides = [1, 1]} : vector<2x128xf32> to vector<2x32xf32>
    %116 = arith.mulf %113, %96 : vector<2x32xf32>
    %117 = arith.mulf %112, %114 : vector<2x32xf32>
    %118 = arith.addf %116, %117 : vector<2x32xf32>
    %119 = math.tanh %118 : vector<2x32xf32>
    %120 = arith.mulf %115, %119 : vector<2x32xf32>
    %c5 = arith.constant 5 : index
    %c0_44 = arith.constant 0 : index
    %c0_45 = arith.constant 0 : index
    %121 = vector.load %arg2[%c5, %c0_44, %c0_45] : memref<8x2x16xf32, #tpu.memory_space<vmem>>, vector<1x2x16xf32>
    %122 = vector.shape_cast %121 : vector<1x2x16xf32> to vector<2x16xf32>
    %cst_46 = arith.constant dense<0.000000e+00> : vector<2x128xf32>
    %123 = tpu.matmul %122, %0, %cst_46 {dimension_numbers = #tpu.dot_dimension_numbers<[1], [0], [0], [1], [0, 0, 1, 1], [], []>} : vector<2x16xf32>, vector<16x128xf32>, vector<2x128xf32> -> vector<2x128xf32>
    %cst_47 = arith.constant dense<0.000000e+00> : vector<2x128xf32>
    %124 = tpu.matmul %120, %1, %cst_47 {dimension_numbers = #tpu.dot_dimension_numbers<[1], [0], [0], [1], [0, 0, 1, 1], [], []>} : vector<2x32xf32>, vector<32x128xf32>, vector<2x128xf32> -> vector<2x128xf32>
    %125 = arith.addf %123, %124 : vector<2x128xf32>
    %126 = vector.broadcast %2 : vector<1x128xf32> to vector<2x128xf32>
    %127 = arith.addf %125, %126 : vector<2x128xf32>
    %128 = arith.negf %127 : vector<2x128xf32>
    %129 = math.exp %128 : vector<2x128xf32>
    %cst_48 = arith.constant 1.000000e+00 : f32
    %130 = vector.broadcast %cst_48 : f32 to vector<2x128xf32>
    %131 = arith.addf %130, %129 : vector<2x128xf32>
    %132 = arith.divf %130, %131 : vector<2x128xf32>
    %133 = math.tanh %127 : vector<2x128xf32>
    %134 = vector.extract_strided_slice %132 {offsets = [0, 0], sizes = [2, 32], strides = [1, 1]} : vector<2x128xf32> to vector<2x32xf32>
    %135 = vector.extract_strided_slice %132 {offsets = [0, 32], sizes = [2, 32], strides = [1, 1]} : vector<2x128xf32> to vector<2x32xf32>
    %136 = vector.extract_strided_slice %133 {offsets = [0, 64], sizes = [2, 32], strides = [1, 1]} : vector<2x128xf32> to vector<2x32xf32>
    %137 = vector.extract_strided_slice %132 {offsets = [0, 96], sizes = [2, 32], strides = [1, 1]} : vector<2x128xf32> to vector<2x32xf32>
    %138 = arith.mulf %135, %118 : vector<2x32xf32>
    %139 = arith.mulf %134, %136 : vector<2x32xf32>
    %140 = arith.addf %138, %139 : vector<2x32xf32>
    %141 = math.tanh %140 : vector<2x32xf32>
    %142 = arith.mulf %137, %141 : vector<2x32xf32>
    %c6 = arith.constant 6 : index
    %c0_49 = arith.constant 0 : index
    %c0_50 = arith.constant 0 : index
    %143 = vector.load %arg2[%c6, %c0_49, %c0_50] : memref<8x2x16xf32, #tpu.memory_space<vmem>>, vector<1x2x16xf32>
    %144 = vector.shape_cast %143 : vector<1x2x16xf32> to vector<2x16xf32>
    %cst_51 = arith.constant dense<0.000000e+00> : vector<2x128xf32>
    %145 = tpu.matmul %144, %0, %cst_51 {dimension_numbers = #tpu.dot_dimension_numbers<[1], [0], [0], [1], [0, 0, 1, 1], [], []>} : vector<2x16xf32>, vector<16x128xf32>, vector<2x128xf32> -> vector<2x128xf32>
    %cst_52 = arith.constant dense<0.000000e+00> : vector<2x128xf32>
    %146 = tpu.matmul %142, %1, %cst_52 {dimension_numbers = #tpu.dot_dimension_numbers<[1], [0], [0], [1], [0, 0, 1, 1], [], []>} : vector<2x32xf32>, vector<32x128xf32>, vector<2x128xf32> -> vector<2x128xf32>
    %147 = arith.addf %145, %146 : vector<2x128xf32>
    %148 = vector.broadcast %2 : vector<1x128xf32> to vector<2x128xf32>
    %149 = arith.addf %147, %148 : vector<2x128xf32>
    %150 = arith.negf %149 : vector<2x128xf32>
    %151 = math.exp %150 : vector<2x128xf32>
    %cst_53 = arith.constant 1.000000e+00 : f32
    %152 = vector.broadcast %cst_53 : f32 to vector<2x128xf32>
    %153 = arith.addf %152, %151 : vector<2x128xf32>
    %154 = arith.divf %152, %153 : vector<2x128xf32>
    %155 = math.tanh %149 : vector<2x128xf32>
    %156 = vector.extract_strided_slice %154 {offsets = [0, 0], sizes = [2, 32], strides = [1, 1]} : vector<2x128xf32> to vector<2x32xf32>
    %157 = vector.extract_strided_slice %154 {offsets = [0, 32], sizes = [2, 32], strides = [1, 1]} : vector<2x128xf32> to vector<2x32xf32>
    %158 = vector.extract_strided_slice %155 {offsets = [0, 64], sizes = [2, 32], strides = [1, 1]} : vector<2x128xf32> to vector<2x32xf32>
    %159 = vector.extract_strided_slice %154 {offsets = [0, 96], sizes = [2, 32], strides = [1, 1]} : vector<2x128xf32> to vector<2x32xf32>
    %160 = arith.mulf %157, %140 : vector<2x32xf32>
    %161 = arith.mulf %156, %158 : vector<2x32xf32>
    %162 = arith.addf %160, %161 : vector<2x32xf32>
    %163 = math.tanh %162 : vector<2x32xf32>
    %164 = arith.mulf %159, %163 : vector<2x32xf32>
    %c7 = arith.constant 7 : index
    %c0_54 = arith.constant 0 : index
    %c0_55 = arith.constant 0 : index
    %165 = vector.load %arg2[%c7, %c0_54, %c0_55] : memref<8x2x16xf32, #tpu.memory_space<vmem>>, vector<1x2x16xf32>
    %166 = vector.shape_cast %165 : vector<1x2x16xf32> to vector<2x16xf32>
    %cst_56 = arith.constant dense<0.000000e+00> : vector<2x128xf32>
    %167 = tpu.matmul %166, %0, %cst_56 {dimension_numbers = #tpu.dot_dimension_numbers<[1], [0], [0], [1], [0, 0, 1, 1], [], []>} : vector<2x16xf32>, vector<16x128xf32>, vector<2x128xf32> -> vector<2x128xf32>
    %cst_57 = arith.constant dense<0.000000e+00> : vector<2x128xf32>
    %168 = tpu.matmul %164, %1, %cst_57 {dimension_numbers = #tpu.dot_dimension_numbers<[1], [0], [0], [1], [0, 0, 1, 1], [], []>} : vector<2x32xf32>, vector<32x128xf32>, vector<2x128xf32> -> vector<2x128xf32>
    %169 = arith.addf %167, %168 : vector<2x128xf32>
    %170 = vector.broadcast %2 : vector<1x128xf32> to vector<2x128xf32>
    %171 = arith.addf %169, %170 : vector<2x128xf32>
    %172 = arith.negf %171 : vector<2x128xf32>
    %173 = math.exp %172 : vector<2x128xf32>
    %cst_58 = arith.constant 1.000000e+00 : f32
    %174 = vector.broadcast %cst_58 : f32 to vector<2x128xf32>
    %175 = arith.addf %174, %173 : vector<2x128xf32>
    %176 = arith.divf %174, %175 : vector<2x128xf32>
    %177 = math.tanh %171 : vector<2x128xf32>
    %178 = vector.extract_strided_slice %176 {offsets = [0, 0], sizes = [2, 32], strides = [1, 1]} : vector<2x128xf32> to vector<2x32xf32>
    %179 = vector.extract_strided_slice %176 {offsets = [0, 32], sizes = [2, 32], strides = [1, 1]} : vector<2x128xf32> to vector<2x32xf32>
    %180 = vector.extract_strided_slice %177 {offsets = [0, 64], sizes = [2, 32], strides = [1, 1]} : vector<2x128xf32> to vector<2x32xf32>
    %181 = vector.extract_strided_slice %176 {offsets = [0, 96], sizes = [2, 32], strides = [1, 1]} : vector<2x128xf32> to vector<2x32xf32>
    %182 = arith.mulf %179, %162 : vector<2x32xf32>
    %183 = arith.mulf %178, %180 : vector<2x32xf32>
    %184 = arith.addf %182, %183 : vector<2x32xf32>
    %185 = math.tanh %184 : vector<2x32xf32>
    %186 = arith.mulf %181, %185 : vector<2x32xf32>
    %cst_59 = arith.constant 0.000000e+00 : f32
    %187 = vector.broadcast %cst_59 : f32 to vector<2x128xf32>
    %c0_60 = arith.constant 0 : index
    %c0_61 = arith.constant 0 : index
    %c0_62 = arith.constant 0 : index
    %188 = vector.load %arg13[%c0_60, %c0_61, %c0_62] : memref<8x2x128xf32, #tpu.memory_space<vmem>>, vector<1x2x128xf32>
    %189 = vector.shape_cast %188 : vector<1x2x128xf32> to vector<2x128xf32>
    %190 = vector.shape_cast %187 : vector<2x128xf32> to vector<1x2x128xf32>
    tpu.vector_store %arg13[%c0_60, %c0_61, %c0_62], %190 {strides = array<i32>} : memref<8x2x128xf32, #tpu.memory_space<vmem>>, vector<1x2x128xf32>,
    %191 = tpu.iota {dimensions = array<i32: 1>} : vector<2x128xi32>
    %192 = arith.sitofp %191 : vector<2x128xi32> to vector<2x128xf32>
    %c32_i32 = arith.constant 32 : i32
    %193 = vector.broadcast %c32_i32 : i32 to vector<2x128xi32>
    %194 = arith.cmpi slt, %191, %193 : vector<2x128xi32>
    %c0_63 = arith.constant 0 : index
    %c0_64 = arith.constant 0 : index
    %c0_65 = arith.constant 0 : index
    %195 = vector.load %arg12[%c0_63, %c0_64, %c0_65] : memref<8x2x128xf32, #tpu.memory_space<vmem>>, vector<1x2x128xf32>
    %196 = vector.shape_cast %195 : vector<1x2x128xf32> to vector<2x128xf32>
    %cst_66 = arith.constant dense<0.000000e+00> : vector<2x16xf32>
    %197 = tpu.matmul %196, %3, %cst_66 {dimension_numbers = #tpu.dot_dimension_numbers<[1], [0], [0], [1], [0, 0, 1, 1], [], []>} : vector<2x128xf32>, vector<128x16xf32>, vector<2x16xf32> -> vector<2x16xf32>
    %cst_67 = arith.constant dense<0.000000e+00> : vector<2x128xf32>
    %198 = tpu.matmul %197, %4, %cst_67 {dimension_numbers = #tpu.dot_dimension_numbers<[1], [0], [0], [1], [0, 0, 1, 1], [], []>} : vector<2x16xf32>, vector<16x128xf32>, vector<2x128xf32> -> vector<2x128xf32>
    %cst_68 = arith.constant dense<0.000000e+00> : vector<2x128xf32>
    %199 = tpu.matmul %186, %5, %cst_68 {dimension_numbers = #tpu.dot_dimension_numbers<[1], [0], [0], [1], [0, 0, 1, 1], [], []>} : vector<2x32xf32>, vector<32x128xf32>, vector<2x128xf32> -> vector<2x128xf32>
    %200 = arith.addf %198, %199 : vector<2x128xf32>
    %201 = vector.broadcast %6 : vector<1x128xf32> to vector<2x128xf32>
    %202 = arith.addf %200, %201 : vector<2x128xf32>
    %203 = arith.negf %202 : vector<2x128xf32>
    %204 = math.exp %203 : vector<2x128xf32>
    %cst_69 = arith.constant 1.000000e+00 : f32
    %205 = vector.broadcast %cst_69 : f32 to vector<2x128xf32>
    %206 = arith.addf %205, %204 : vector<2x128xf32>
    %207 = arith.divf %205, %206 : vector<2x128xf32>
    %208 = math.tanh %202 : vector<2x128xf32>
    %209 = vector.extract_strided_slice %207 {offsets = [0, 0], sizes = [2, 32], strides = [1, 1]} : vector<2x128xf32> to vector<2x32xf32>
    %210 = vector.extract_strided_slice %207 {offsets = [0, 32], sizes = [2, 32], strides = [1, 1]} : vector<2x128xf32> to vector<2x32xf32>
    %211 = vector.extract_strided_slice %208 {offsets = [0, 64], sizes = [2, 32], strides = [1, 1]} : vector<2x128xf32> to vector<2x32xf32>
    %212 = vector.extract_strided_slice %207 {offsets = [0, 96], sizes = [2, 32], strides = [1, 1]} : vector<2x128xf32> to vector<2x32xf32>
    %213 = arith.mulf %210, %184 : vector<2x32xf32>
    %214 = arith.mulf %209, %211 : vector<2x32xf32>
    %215 = arith.addf %213, %214 : vector<2x32xf32>
    %216 = math.tanh %215 : vector<2x32xf32>
    %217 = arith.mulf %212, %216 : vector<2x32xf32>
    %cst_70 = arith.constant dense<0.000000e+00> : vector<2x128xf32>
    %218 = tpu.matmul %217, %7, %cst_70 {dimension_numbers = #tpu.dot_dimension_numbers<[1], [0], [0], [1], [0, 0, 1, 1], [], []>} : vector<2x32xf32>, vector<32x128xf32>, vector<2x128xf32> -> vector<2x128xf32>
    %219 = vector.broadcast %8 : vector<1x128xf32> to vector<2x128xf32>
    %220 = arith.addf %218, %219 : vector<2x128xf32>
    %c1_71 = arith.constant 1 : index
    %c0_72 = arith.constant 0 : index
    %c0_73 = arith.constant 0 : index
    %221 = vector.load %arg13[%c1_71, %c0_72, %c0_73] : memref<8x2x128xf32, #tpu.memory_space<vmem>>, vector<1x2x128xf32>
    %222 = vector.shape_cast %221 : vector<1x2x128xf32> to vector<2x128xf32>
    %223 = vector.shape_cast %220 : vector<2x128xf32> to vector<1x2x128xf32>
    tpu.vector_store %arg13[%c1_71, %c0_72, %c0_73], %223 {strides = array<i32>} : memref<8x2x128xf32, #tpu.memory_space<vmem>>, vector<1x2x128xf32>,
    %cst_74 = arith.constant -1.000000e+30 : f32
    %224 = vector.broadcast %cst_74 : f32 to vector<2x128xf32>
    %225 = arith.select %194, %220, %224 : vector<2x128xi1>, vector<2x128xf32>
    %cst_75 = arith.constant dense<0xFF800000> : vector<2xf32>
    %226 = vector.multi_reduction <maximumf>, %225, %cst_75 [1] : vector<2x128xf32> to vector<2xf32>
    %227 = vector.shape_cast %226 : vector<2xf32> to vector<2x1xf32>
    %228 = vector.broadcast %227 : vector<2x1xf32> to vector<2x128xf32>
    %229 = arith.cmpf oeq, %225, %228 : vector<2x128xf32>
    %cst_76 = arith.constant 1.280000e+02 : f32
    %230 = vector.broadcast %cst_76 : f32 to vector<2x128xf32>
    %231 = arith.select %229, %192, %230 : vector<2x128xi1>, vector<2x128xf32>
    %cst_77 = arith.constant dense<0x7F800000> : vector<2xf32>
    %232 = vector.multi_reduction <minimumf>, %231, %cst_77 [1] : vector<2x128xf32> to vector<2xf32>
    %233 = vector.shape_cast %232 : vector<2xf32> to vector<2x1xf32>
    %234 = vector.broadcast %233 : vector<2x1xf32> to vector<2x128xf32>
    %235 = arith.cmpf oeq, %192, %234 : vector<2x128xf32>
    %236 = arith.extui %235 : vector<2x128xi1> to vector<2x128xi32>
    %237 = arith.sitofp %236 : vector<2x128xi32> to vector<2x128xf32>
    %c1_78 = arith.constant 1 : index
    %238 = memref.load %arg1[%c1_78] : memref<8xi32, #tpu.memory_space<smem>>
    %c0_i32 = arith.constant 0 : i32
    %239 = arith.cmpi ne, %238, %c0_i32 : i32
    %240 = arith.extui %239 : i1 to i32
    %241 = arith.sitofp %240 : i32 to f32
    %c1_79 = arith.constant 1 : index
    %c0_80 = arith.constant 0 : index
    %c0_81 = arith.constant 0 : index
    %242 = vector.load %arg12[%c1_79, %c0_80, %c0_81] : memref<8x2x128xf32, #tpu.memory_space<vmem>>, vector<1x2x128xf32>
    %243 = vector.shape_cast %242 : vector<1x2x128xf32> to vector<2x128xf32>
    %244 = vector.broadcast %241 : f32 to vector<2x128xf32>
    %245 = arith.mulf %244, %243 : vector<2x128xf32>
    %cst_82 = arith.constant 1.000000e+00 : f32
    %246 = arith.subf %cst_82, %241 : f32
    %247 = vector.broadcast %246 : f32 to vector<2x128xf32>
    %248 = arith.mulf %247, %237 : vector<2x128xf32>
    %249 = arith.addf %245, %248 : vector<2x128xf32>
    %cst_83 = arith.constant dense<0.000000e+00> : vector<2x16xf32>
    %250 = tpu.matmul %249, %3, %cst_83 {dimension_numbers = #tpu.dot_dimension_numbers<[1], [0], [0], [1], [0, 0, 1, 1], [], []>} : vector<2x128xf32>, vector<128x16xf32>, vector<2x16xf32> -> vector<2x16xf32>
    %cst_84 = arith.constant dense<0.000000e+00> : vector<2x128xf32>
    %251 = tpu.matmul %250, %4, %cst_84 {dimension_numbers = #tpu.dot_dimension_numbers<[1], [0], [0], [1], [0, 0, 1, 1], [], []>} : vector<2x16xf32>, vector<16x128xf32>, vector<2x128xf32> -> vector<2x128xf32>
    %cst_85 = arith.constant dense<0.000000e+00> : vector<2x128xf32>
    %252 = tpu.matmul %217, %5, %cst_85 {dimension_numbers = #tpu.dot_dimension_numbers<[1], [0], [0], [1], [0, 0, 1, 1], [], []>} : vector<2x32xf32>, vector<32x128xf32>, vector<2x128xf32> -> vector<2x128xf32>
    %253 = arith.addf %251, %252 : vector<2x128xf32>
    %254 = vector.broadcast %6 : vector<1x128xf32> to vector<2x128xf32>
    %255 = arith.addf %253, %254 : vector<2x128xf32>
    %256 = arith.negf %255 : vector<2x128xf32>
    %257 = math.exp %256 : vector<2x128xf32>
    %cst_86 = arith.constant 1.000000e+00 : f32
    %258 = vector.broadcast %cst_86 : f32 to vector<2x128xf32>
    %259 = arith.addf %258, %257 : vector<2x128xf32>
    %260 = arith.divf %258, %259 : vector<2x128xf32>
    %261 = math.tanh %255 : vector<2x128xf32>
    %262 = vector.extract_strided_slice %260 {offsets = [0, 0], sizes = [2, 32], strides = [1, 1]} : vector<2x128xf32> to vector<2x32xf32>
    %263 = vector.extract_strided_slice %260 {offsets = [0, 32], sizes = [2, 32], strides = [1, 1]} : vector<2x128xf32> to vector<2x32xf32>
    %264 = vector.extract_strided_slice %261 {offsets = [0, 64], sizes = [2, 32], strides = [1, 1]} : vector<2x128xf32> to vector<2x32xf32>
    %265 = vector.extract_strided_slice %260 {offsets = [0, 96], sizes = [2, 32], strides = [1, 1]} : vector<2x128xf32> to vector<2x32xf32>
    %266 = arith.mulf %263, %215 : vector<2x32xf32>
    %267 = arith.mulf %262, %264 : vector<2x32xf32>
    %268 = arith.addf %266, %267 : vector<2x32xf32>
    %269 = math.tanh %268 : vector<2x32xf32>
    %270 = arith.mulf %265, %269 : vector<2x32xf32>
    %cst_87 = arith.constant dense<0.000000e+00> : vector<2x128xf32>
    %271 = tpu.matmul %270, %7, %cst_87 {dimension_numbers = #tpu.dot_dimension_numbers<[1], [0], [0], [1], [0, 0, 1, 1], [], []>} : vector<2x32xf32>, vector<32x128xf32>, vector<2x128xf32> -> vector<2x128xf32>
    %272 = vector.broadcast %8 : vector<1x128xf32> to vector<2x128xf32>
    %273 = arith.addf %271, %272 : vector<2x128xf32>
    %c2_88 = arith.constant 2 : index
    %c0_89 = arith.constant 0 : index
    %c0_90 = arith.constant 0 : index
    %274 = vector.load %arg13[%c2_88, %c0_89, %c0_90] : memref<8x2x128xf32, #tpu.memory_space<vmem>>, vector<1x2x128xf32>
    %275 = vector.shape_cast %274 : vector<1x2x128xf32> to vector<2x128xf32>
    %276 = vector.shape_cast %273 : vector<2x128xf32> to vector<1x2x128xf32>
    tpu.vector_store %arg13[%c2_88, %c0_89, %c0_90], %276 {strides = array<i32>} : memref<8x2x128xf32, #tpu.memory_space<vmem>>, vector<1x2x128xf32>,
    %cst_91 = arith.constant -1.000000e+30 : f32
    %277 = vector.broadcast %cst_91 : f32 to vector<2x128xf32>
    %278 = arith.select %194, %273, %277 : vector<2x128xi1>, vector<2x128xf32>
    %cst_92 = arith.constant dense<0xFF800000> : vector<2xf32>
    %279 = vector.multi_reduction <maximumf>, %278, %cst_92 [1] : vector<2x128xf32> to vector<2xf32>
    %280 = vector.shape_cast %279 : vector<2xf32> to vector<2x1xf32>
    %281 = vector.broadcast %280 : vector<2x1xf32> to vector<2x128xf32>
    %282 = arith.cmpf oeq, %278, %281 : vector<2x128xf32>
    %cst_93 = arith.constant 1.280000e+02 : f32
    %283 = vector.broadcast %cst_93 : f32 to vector<2x128xf32>
    %284 = arith.select %282, %192, %283 : vector<2x128xi1>, vector<2x128xf32>
    %cst_94 = arith.constant dense<0x7F800000> : vector<2xf32>
    %285 = vector.multi_reduction <minimumf>, %284, %cst_94 [1] : vector<2x128xf32> to vector<2xf32>
    %286 = vector.shape_cast %285 : vector<2xf32> to vector<2x1xf32>
    %287 = vector.broadcast %286 : vector<2x1xf32> to vector<2x128xf32>
    %288 = arith.cmpf oeq, %192, %287 : vector<2x128xf32>
    %289 = arith.extui %288 : vector<2x128xi1> to vector<2x128xi32>
    %290 = arith.sitofp %289 : vector<2x128xi32> to vector<2x128xf32>
    %c2_95 = arith.constant 2 : index
    %291 = memref.load %arg1[%c2_95] : memref<8xi32, #tpu.memory_space<smem>>
    %c0_i32_96 = arith.constant 0 : i32
    %292 = arith.cmpi ne, %291, %c0_i32_96 : i32
    %293 = arith.extui %292 : i1 to i32
    %294 = arith.sitofp %293 : i32 to f32
    %c2_97 = arith.constant 2 : index
    %c0_98 = arith.constant 0 : index
    %c0_99 = arith.constant 0 : index
    %295 = vector.load %arg12[%c2_97, %c0_98, %c0_99] : memref<8x2x128xf32, #tpu.memory_space<vmem>>, vector<1x2x128xf32>
    %296 = vector.shape_cast %295 : vector<1x2x128xf32> to vector<2x128xf32>
    %297 = vector.broadcast %294 : f32 to vector<2x128xf32>
    %298 = arith.mulf %297, %296 : vector<2x128xf32>
    %cst_100 = arith.constant 1.000000e+00 : f32
    %299 = arith.subf %cst_100, %294 : f32
    %300 = vector.broadcast %299 : f32 to vector<2x128xf32>
    %301 = arith.mulf %300, %290 : vector<2x128xf32>
    %302 = arith.addf %298, %301 : vector<2x128xf32>
    %cst_101 = arith.constant dense<0.000000e+00> : vector<2x16xf32>
    %303 = tpu.matmul %302, %3, %cst_101 {dimension_numbers = #tpu.dot_dimension_numbers<[1], [0], [0], [1], [0, 0, 1, 1], [], []>} : vector<2x128xf32>, vector<128x16xf32>, vector<2x16xf32> -> vector<2x16xf32>
    %cst_102 = arith.constant dense<0.000000e+00> : vector<2x128xf32>
    %304 = tpu.matmul %303, %4, %cst_102 {dimension_numbers = #tpu.dot_dimension_numbers<[1], [0], [0], [1], [0, 0, 1, 1], [], []>} : vector<2x16xf32>, vector<16x128xf32>, vector<2x128xf32> -> vector<2x128xf32>
    %cst_103 = arith.constant dense<0.000000e+00> : vector<2x128xf32>
    %305 = tpu.matmul %270, %5, %cst_103 {dimension_numbers = #tpu.dot_dimension_numbers<[1], [0], [0], [1], [0, 0, 1, 1], [], []>} : vector<2x32xf32>, vector<32x128xf32>, vector<2x128xf32> -> vector<2x128xf32>
    %306 = arith.addf %304, %305 : vector<2x128xf32>
    %307 = vector.broadcast %6 : vector<1x128xf32> to vector<2x128xf32>
    %308 = arith.addf %306, %307 : vector<2x128xf32>
    %309 = arith.negf %308 : vector<2x128xf32>
    %310 = math.exp %309 : vector<2x128xf32>
    %cst_104 = arith.constant 1.000000e+00 : f32
    %311 = vector.broadcast %cst_104 : f32 to vector<2x128xf32>
    %312 = arith.addf %311, %310 : vector<2x128xf32>
    %313 = arith.divf %311, %312 : vector<2x128xf32>
    %314 = math.tanh %308 : vector<2x128xf32>
    %315 = vector.extract_strided_slice %313 {offsets = [0, 0], sizes = [2, 32], strides = [1, 1]} : vector<2x128xf32> to vector<2x32xf32>
    %316 = vector.extract_strided_slice %313 {offsets = [0, 32], sizes = [2, 32], strides = [1, 1]} : vector<2x128xf32> to vector<2x32xf32>
    %317 = vector.extract_strided_slice %314 {offsets = [0, 64], sizes = [2, 32], strides = [1, 1]} : vector<2x128xf32> to vector<2x32xf32>
    %318 = vector.extract_strided_slice %313 {offsets = [0, 96], sizes = [2, 32], strides = [1, 1]} : vector<2x128xf32> to vector<2x32xf32>
    %319 = arith.mulf %316, %268 : vector<2x32xf32>
    %320 = arith.mulf %315, %317 : vector<2x32xf32>
    %321 = arith.addf %319, %320 : vector<2x32xf32>
    %322 = math.tanh %321 : vector<2x32xf32>
    %323 = arith.mulf %318, %322 : vector<2x32xf32>
    %cst_105 = arith.constant dense<0.000000e+00> : vector<2x128xf32>
    %324 = tpu.matmul %323, %7, %cst_105 {dimension_numbers = #tpu.dot_dimension_numbers<[1], [0], [0], [1], [0, 0, 1, 1], [], []>} : vector<2x32xf32>, vector<32x128xf32>, vector<2x128xf32> -> vector<2x128xf32>
    %325 = vector.broadcast %8 : vector<1x128xf32> to vector<2x128xf32>
    %326 = arith.addf %324, %325 : vector<2x128xf32>
    %c3_106 = arith.constant 3 : index
    %c0_107 = arith.constant 0 : index
    %c0_108 = arith.constant 0 : index
    %327 = vector.load %arg13[%c3_106, %c0_107, %c0_108] : memref<8x2x128xf32, #tpu.memory_space<vmem>>, vector<1x2x128xf32>
    %328 = vector.shape_cast %327 : vector<1x2x128xf32> to vector<2x128xf32>
    %329 = vector.shape_cast %326 : vector<2x128xf32> to vector<1x2x128xf32>
    tpu.vector_store %arg13[%c3_106, %c0_107, %c0_108], %329 {strides = array<i32>} : memref<8x2x128xf32, #tpu.memory_space<vmem>>, vector<1x2x128xf32>,
    %cst_109 = arith.constant -1.000000e+30 : f32
    %330 = vector.broadcast %cst_109 : f32 to vector<2x128xf32>
    %331 = arith.select %194, %326, %330 : vector<2x128xi1>, vector<2x128xf32>
    %cst_110 = arith.constant dense<0xFF800000> : vector<2xf32>
    %332 = vector.multi_reduction <maximumf>, %331, %cst_110 [1] : vector<2x128xf32> to vector<2xf32>
    %333 = vector.shape_cast %332 : vector<2xf32> to vector<2x1xf32>
    %334 = vector.broadcast %333 : vector<2x1xf32> to vector<2x128xf32>
    %335 = arith.cmpf oeq, %331, %334 : vector<2x128xf32>
    %cst_111 = arith.constant 1.280000e+02 : f32
    %336 = vector.broadcast %cst_111 : f32 to vector<2x128xf32>
    %337 = arith.select %335, %192, %336 : vector<2x128xi1>, vector<2x128xf32>
    %cst_112 = arith.constant dense<0x7F800000> : vector<2xf32>
    %338 = vector.multi_reduction <minimumf>, %337, %cst_112 [1] : vector<2x128xf32> to vector<2xf32>
    %339 = vector.shape_cast %338 : vector<2xf32> to vector<2x1xf32>
    %340 = vector.broadcast %339 : vector<2x1xf32> to vector<2x128xf32>
    %341 = arith.cmpf oeq, %192, %340 : vector<2x128xf32>
    %342 = arith.extui %341 : vector<2x128xi1> to vector<2x128xi32>
    %343 = arith.sitofp %342 : vector<2x128xi32> to vector<2x128xf32>
    %c3_113 = arith.constant 3 : index
    %344 = memref.load %arg1[%c3_113] : memref<8xi32, #tpu.memory_space<smem>>
    %c0_i32_114 = arith.constant 0 : i32
    %345 = arith.cmpi ne, %344, %c0_i32_114 : i32
    %346 = arith.extui %345 : i1 to i32
    %347 = arith.sitofp %346 : i32 to f32
    %c3_115 = arith.constant 3 : index
    %c0_116 = arith.constant 0 : index
    %c0_117 = arith.constant 0 : index
    %348 = vector.load %arg12[%c3_115, %c0_116, %c0_117] : memref<8x2x128xf32, #tpu.memory_space<vmem>>, vector<1x2x128xf32>
    %349 = vector.shape_cast %348 : vector<1x2x128xf32> to vector<2x128xf32>
    %350 = vector.broadcast %347 : f32 to vector<2x128xf32>
    %351 = arith.mulf %350, %349 : vector<2x128xf32>
    %cst_118 = arith.constant 1.000000e+00 : f32
    %352 = arith.subf %cst_118, %347 : f32
    %353 = vector.broadcast %352 : f32 to vector<2x128xf32>
    %354 = arith.mulf %353, %343 : vector<2x128xf32>
    %355 = arith.addf %351, %354 : vector<2x128xf32>
    %cst_119 = arith.constant dense<0.000000e+00> : vector<2x16xf32>
    %356 = tpu.matmul %355, %3, %cst_119 {dimension_numbers = #tpu.dot_dimension_numbers<[1], [0], [0], [1], [0, 0, 1, 1], [], []>} : vector<2x128xf32>, vector<128x16xf32>, vector<2x16xf32> -> vector<2x16xf32>
    %cst_120 = arith.constant dense<0.000000e+00> : vector<2x128xf32>
    %357 = tpu.matmul %356, %4, %cst_120 {dimension_numbers = #tpu.dot_dimension_numbers<[1], [0], [0], [1], [0, 0, 1, 1], [], []>} : vector<2x16xf32>, vector<16x128xf32>, vector<2x128xf32> -> vector<2x128xf32>
    %cst_121 = arith.constant dense<0.000000e+00> : vector<2x128xf32>
    %358 = tpu.matmul %323, %5, %cst_121 {dimension_numbers = #tpu.dot_dimension_numbers<[1], [0], [0], [1], [0, 0, 1, 1], [], []>} : vector<2x32xf32>, vector<32x128xf32>, vector<2x128xf32> -> vector<2x128xf32>
    %359 = arith.addf %357, %358 : vector<2x128xf32>
    %360 = vector.broadcast %6 : vector<1x128xf32> to vector<2x128xf32>
    %361 = arith.addf %359, %360 : vector<2x128xf32>
    %362 = arith.negf %361 : vector<2x128xf32>
    %363 = math.exp %362 : vector<2x128xf32>
    %cst_122 = arith.constant 1.000000e+00 : f32
    %364 = vector.broadcast %cst_122 : f32 to vector<2x128xf32>
    %365 = arith.addf %364, %363 : vector<2x128xf32>
    %366 = arith.divf %364, %365 : vector<2x128xf32>
    %367 = math.tanh %361 : vector<2x128xf32>
    %368 = vector.extract_strided_slice %366 {offsets = [0, 0], sizes = [2, 32], strides = [1, 1]} : vector<2x128xf32> to vector<2x32xf32>
    %369 = vector.extract_strided_slice %366 {offsets = [0, 32], sizes = [2, 32], strides = [1, 1]} : vector<2x128xf32> to vector<2x32xf32>
    %370 = vector.extract_strided_slice %367 {offsets = [0, 64], sizes = [2, 32], strides = [1, 1]} : vector<2x128xf32> to vector<2x32xf32>
    %371 = vector.extract_strided_slice %366 {offsets = [0, 96], sizes = [2, 32], strides = [1, 1]} : vector<2x128xf32> to vector<2x32xf32>
    %372 = arith.mulf %369, %321 : vector<2x32xf32>
    %373 = arith.mulf %368, %370 : vector<2x32xf32>
    %374 = arith.addf %372, %373 : vector<2x32xf32>
    %375 = math.tanh %374 : vector<2x32xf32>
    %376 = arith.mulf %371, %375 : vector<2x32xf32>
    %cst_123 = arith.constant dense<0.000000e+00> : vector<2x128xf32>
    %377 = tpu.matmul %376, %7, %cst_123 {dimension_numbers = #tpu.dot_dimension_numbers<[1], [0], [0], [1], [0, 0, 1, 1], [], []>} : vector<2x32xf32>, vector<32x128xf32>, vector<2x128xf32> -> vector<2x128xf32>
    %378 = vector.broadcast %8 : vector<1x128xf32> to vector<2x128xf32>
    %379 = arith.addf %377, %378 : vector<2x128xf32>
    %c4_124 = arith.constant 4 : index
    %c0_125 = arith.constant 0 : index
    %c0_126 = arith.constant 0 : index
    %380 = vector.load %arg13[%c4_124, %c0_125, %c0_126] : memref<8x2x128xf32, #tpu.memory_space<vmem>>, vector<1x2x128xf32>
    %381 = vector.shape_cast %380 : vector<1x2x128xf32> to vector<2x128xf32>
    %382 = vector.shape_cast %379 : vector<2x128xf32> to vector<1x2x128xf32>
    tpu.vector_store %arg13[%c4_124, %c0_125, %c0_126], %382 {strides = array<i32>} : memref<8x2x128xf32, #tpu.memory_space<vmem>>, vector<1x2x128xf32>,
    %cst_127 = arith.constant -1.000000e+30 : f32
    %383 = vector.broadcast %cst_127 : f32 to vector<2x128xf32>
    %384 = arith.select %194, %379, %383 : vector<2x128xi1>, vector<2x128xf32>
    %cst_128 = arith.constant dense<0xFF800000> : vector<2xf32>
    %385 = vector.multi_reduction <maximumf>, %384, %cst_128 [1] : vector<2x128xf32> to vector<2xf32>
    %386 = vector.shape_cast %385 : vector<2xf32> to vector<2x1xf32>
    %387 = vector.broadcast %386 : vector<2x1xf32> to vector<2x128xf32>
    %388 = arith.cmpf oeq, %384, %387 : vector<2x128xf32>
    %cst_129 = arith.constant 1.280000e+02 : f32
    %389 = vector.broadcast %cst_129 : f32 to vector<2x128xf32>
    %390 = arith.select %388, %192, %389 : vector<2x128xi1>, vector<2x128xf32>
    %cst_130 = arith.constant dense<0x7F800000> : vector<2xf32>
    %391 = vector.multi_reduction <minimumf>, %390, %cst_130 [1] : vector<2x128xf32> to vector<2xf32>
    %392 = vector.shape_cast %391 : vector<2xf32> to vector<2x1xf32>
    %393 = vector.broadcast %392 : vector<2x1xf32> to vector<2x128xf32>
    %394 = arith.cmpf oeq, %192, %393 : vector<2x128xf32>
    %395 = arith.extui %394 : vector<2x128xi1> to vector<2x128xi32>
    %396 = arith.sitofp %395 : vector<2x128xi32> to vector<2x128xf32>
    %c4_131 = arith.constant 4 : index
    %397 = memref.load %arg1[%c4_131] : memref<8xi32, #tpu.memory_space<smem>>
    %c0_i32_132 = arith.constant 0 : i32
    %398 = arith.cmpi ne, %397, %c0_i32_132 : i32
    %399 = arith.extui %398 : i1 to i32
    %400 = arith.sitofp %399 : i32 to f32
    %c4_133 = arith.constant 4 : index
    %c0_134 = arith.constant 0 : index
    %c0_135 = arith.constant 0 : index
    %401 = vector.load %arg12[%c4_133, %c0_134, %c0_135] : memref<8x2x128xf32, #tpu.memory_space<vmem>>, vector<1x2x128xf32>
    %402 = vector.shape_cast %401 : vector<1x2x128xf32> to vector<2x128xf32>
    %403 = vector.broadcast %400 : f32 to vector<2x128xf32>
    %404 = arith.mulf %403, %402 : vector<2x128xf32>
    %cst_136 = arith.constant 1.000000e+00 : f32
    %405 = arith.subf %cst_136, %400 : f32
    %406 = vector.broadcast %405 : f32 to vector<2x128xf32>
    %407 = arith.mulf %406, %396 : vector<2x128xf32>
    %408 = arith.addf %404, %407 : vector<2x128xf32>
    %cst_137 = arith.constant dense<0.000000e+00> : vector<2x16xf32>
    %409 = tpu.matmul %408, %3, %cst_137 {dimension_numbers = #tpu.dot_dimension_numbers<[1], [0], [0], [1], [0, 0, 1, 1], [], []>} : vector<2x128xf32>, vector<128x16xf32>, vector<2x16xf32> -> vector<2x16xf32>
    %cst_138 = arith.constant dense<0.000000e+00> : vector<2x128xf32>
    %410 = tpu.matmul %409, %4, %cst_138 {dimension_numbers = #tpu.dot_dimension_numbers<[1], [0], [0], [1], [0, 0, 1, 1], [], []>} : vector<2x16xf32>, vector<16x128xf32>, vector<2x128xf32> -> vector<2x128xf32>
    %cst_139 = arith.constant dense<0.000000e+00> : vector<2x128xf32>
    %411 = tpu.matmul %376, %5, %cst_139 {dimension_numbers = #tpu.dot_dimension_numbers<[1], [0], [0], [1], [0, 0, 1, 1], [], []>} : vector<2x32xf32>, vector<32x128xf32>, vector<2x128xf32> -> vector<2x128xf32>
    %412 = arith.addf %410, %411 : vector<2x128xf32>
    %413 = vector.broadcast %6 : vector<1x128xf32> to vector<2x128xf32>
    %414 = arith.addf %412, %413 : vector<2x128xf32>
    %415 = arith.negf %414 : vector<2x128xf32>
    %416 = math.exp %415 : vector<2x128xf32>
    %cst_140 = arith.constant 1.000000e+00 : f32
    %417 = vector.broadcast %cst_140 : f32 to vector<2x128xf32>
    %418 = arith.addf %417, %416 : vector<2x128xf32>
    %419 = arith.divf %417, %418 : vector<2x128xf32>
    %420 = math.tanh %414 : vector<2x128xf32>
    %421 = vector.extract_strided_slice %419 {offsets = [0, 0], sizes = [2, 32], strides = [1, 1]} : vector<2x128xf32> to vector<2x32xf32>
    %422 = vector.extract_strided_slice %419 {offsets = [0, 32], sizes = [2, 32], strides = [1, 1]} : vector<2x128xf32> to vector<2x32xf32>
    %423 = vector.extract_strided_slice %420 {offsets = [0, 64], sizes = [2, 32], strides = [1, 1]} : vector<2x128xf32> to vector<2x32xf32>
    %424 = vector.extract_strided_slice %419 {offsets = [0, 96], sizes = [2, 32], strides = [1, 1]} : vector<2x128xf32> to vector<2x32xf32>
    %425 = arith.mulf %422, %374 : vector<2x32xf32>
    %426 = arith.mulf %421, %423 : vector<2x32xf32>
    %427 = arith.addf %425, %426 : vector<2x32xf32>
    %428 = math.tanh %427 : vector<2x32xf32>
    %429 = arith.mulf %424, %428 : vector<2x32xf32>
    %cst_141 = arith.constant dense<0.000000e+00> : vector<2x128xf32>
    %430 = tpu.matmul %429, %7, %cst_141 {dimension_numbers = #tpu.dot_dimension_numbers<[1], [0], [0], [1], [0, 0, 1, 1], [], []>} : vector<2x32xf32>, vector<32x128xf32>, vector<2x128xf32> -> vector<2x128xf32>
    %431 = vector.broadcast %8 : vector<1x128xf32> to vector<2x128xf32>
    %432 = arith.addf %430, %431 : vector<2x128xf32>
    %c5_142 = arith.constant 5 : index
    %c0_143 = arith.constant 0 : index
    %c0_144 = arith.constant 0 : index
    %433 = vector.load %arg13[%c5_142, %c0_143, %c0_144] : memref<8x2x128xf32, #tpu.memory_space<vmem>>, vector<1x2x128xf32>
    %434 = vector.shape_cast %433 : vector<1x2x128xf32> to vector<2x128xf32>
    %435 = vector.shape_cast %432 : vector<2x128xf32> to vector<1x2x128xf32>
    tpu.vector_store %arg13[%c5_142, %c0_143, %c0_144], %435 {strides = array<i32>} : memref<8x2x128xf32, #tpu.memory_space<vmem>>, vector<1x2x128xf32>,
    %cst_145 = arith.constant -1.000000e+30 : f32
    %436 = vector.broadcast %cst_145 : f32 to vector<2x128xf32>
    %437 = arith.select %194, %432, %436 : vector<2x128xi1>, vector<2x128xf32>
    %cst_146 = arith.constant dense<0xFF800000> : vector<2xf32>
    %438 = vector.multi_reduction <maximumf>, %437, %cst_146 [1] : vector<2x128xf32> to vector<2xf32>
    %439 = vector.shape_cast %438 : vector<2xf32> to vector<2x1xf32>
    %440 = vector.broadcast %439 : vector<2x1xf32> to vector<2x128xf32>
    %441 = arith.cmpf oeq, %437, %440 : vector<2x128xf32>
    %cst_147 = arith.constant 1.280000e+02 : f32
    %442 = vector.broadcast %cst_147 : f32 to vector<2x128xf32>
    %443 = arith.select %441, %192, %442 : vector<2x128xi1>, vector<2x128xf32>
    %cst_148 = arith.constant dense<0x7F800000> : vector<2xf32>
    %444 = vector.multi_reduction <minimumf>, %443, %cst_148 [1] : vector<2x128xf32> to vector<2xf32>
    %445 = vector.shape_cast %444 : vector<2xf32> to vector<2x1xf32>
    %446 = vector.broadcast %445 : vector<2x1xf32> to vector<2x128xf32>
    %447 = arith.cmpf oeq, %192, %446 : vector<2x128xf32>
    %448 = arith.extui %447 : vector<2x128xi1> to vector<2x128xi32>
    %449 = arith.sitofp %448 : vector<2x128xi32> to vector<2x128xf32>
    %c5_149 = arith.constant 5 : index
    %450 = memref.load %arg1[%c5_149] : memref<8xi32, #tpu.memory_space<smem>>
    %c0_i32_150 = arith.constant 0 : i32
    %451 = arith.cmpi ne, %450, %c0_i32_150 : i32
    %452 = arith.extui %451 : i1 to i32
    %453 = arith.sitofp %452 : i32 to f32
    %c5_151 = arith.constant 5 : index
    %c0_152 = arith.constant 0 : index
    %c0_153 = arith.constant 0 : index
    %454 = vector.load %arg12[%c5_151, %c0_152, %c0_153] : memref<8x2x128xf32, #tpu.memory_space<vmem>>, vector<1x2x128xf32>
    %455 = vector.shape_cast %454 : vector<1x2x128xf32> to vector<2x128xf32>
    %456 = vector.broadcast %453 : f32 to vector<2x128xf32>
    %457 = arith.mulf %456, %455 : vector<2x128xf32>
    %cst_154 = arith.constant 1.000000e+00 : f32
    %458 = arith.subf %cst_154, %453 : f32
    %459 = vector.broadcast %458 : f32 to vector<2x128xf32>
    %460 = arith.mulf %459, %449 : vector<2x128xf32>
    %461 = arith.addf %457, %460 : vector<2x128xf32>
    %cst_155 = arith.constant dense<0.000000e+00> : vector<2x16xf32>
    %462 = tpu.matmul %461, %3, %cst_155 {dimension_numbers = #tpu.dot_dimension_numbers<[1], [0], [0], [1], [0, 0, 1, 1], [], []>} : vector<2x128xf32>, vector<128x16xf32>, vector<2x16xf32> -> vector<2x16xf32>
    %cst_156 = arith.constant dense<0.000000e+00> : vector<2x128xf32>
    %463 = tpu.matmul %462, %4, %cst_156 {dimension_numbers = #tpu.dot_dimension_numbers<[1], [0], [0], [1], [0, 0, 1, 1], [], []>} : vector<2x16xf32>, vector<16x128xf32>, vector<2x128xf32> -> vector<2x128xf32>
    %cst_157 = arith.constant dense<0.000000e+00> : vector<2x128xf32>
    %464 = tpu.matmul %429, %5, %cst_157 {dimension_numbers = #tpu.dot_dimension_numbers<[1], [0], [0], [1], [0, 0, 1, 1], [], []>} : vector<2x32xf32>, vector<32x128xf32>, vector<2x128xf32> -> vector<2x128xf32>
    %465 = arith.addf %463, %464 : vector<2x128xf32>
    %466 = vector.broadcast %6 : vector<1x128xf32> to vector<2x128xf32>
    %467 = arith.addf %465, %466 : vector<2x128xf32>
    %468 = arith.negf %467 : vector<2x128xf32>
    %469 = math.exp %468 : vector<2x128xf32>
    %cst_158 = arith.constant 1.000000e+00 : f32
    %470 = vector.broadcast %cst_158 : f32 to vector<2x128xf32>
    %471 = arith.addf %470, %469 : vector<2x128xf32>
    %472 = arith.divf %470, %471 : vector<2x128xf32>
    %473 = math.tanh %467 : vector<2x128xf32>
    %474 = vector.extract_strided_slice %472 {offsets = [0, 0], sizes = [2, 32], strides = [1, 1]} : vector<2x128xf32> to vector<2x32xf32>
    %475 = vector.extract_strided_slice %472 {offsets = [0, 32], sizes = [2, 32], strides = [1, 1]} : vector<2x128xf32> to vector<2x32xf32>
    %476 = vector.extract_strided_slice %473 {offsets = [0, 64], sizes = [2, 32], strides = [1, 1]} : vector<2x128xf32> to vector<2x32xf32>
    %477 = vector.extract_strided_slice %472 {offsets = [0, 96], sizes = [2, 32], strides = [1, 1]} : vector<2x128xf32> to vector<2x32xf32>
    %478 = arith.mulf %475, %427 : vector<2x32xf32>
    %479 = arith.mulf %474, %476 : vector<2x32xf32>
    %480 = arith.addf %478, %479 : vector<2x32xf32>
    %481 = math.tanh %480 : vector<2x32xf32>
    %482 = arith.mulf %477, %481 : vector<2x32xf32>
    %cst_159 = arith.constant dense<0.000000e+00> : vector<2x128xf32>
    %483 = tpu.matmul %482, %7, %cst_159 {dimension_numbers = #tpu.dot_dimension_numbers<[1], [0], [0], [1], [0, 0, 1, 1], [], []>} : vector<2x32xf32>, vector<32x128xf32>, vector<2x128xf32> -> vector<2x128xf32>
    %484 = vector.broadcast %8 : vector<1x128xf32> to vector<2x128xf32>
    %485 = arith.addf %483, %484 : vector<2x128xf32>
    %c6_160 = arith.constant 6 : index
    %c0_161 = arith.constant 0 : index
    %c0_162 = arith.constant 0 : index
    %486 = vector.load %arg13[%c6_160, %c0_161, %c0_162] : memref<8x2x128xf32, #tpu.memory_space<vmem>>, vector<1x2x128xf32>
    %487 = vector.shape_cast %486 : vector<1x2x128xf32> to vector<2x128xf32>
    %488 = vector.shape_cast %485 : vector<2x128xf32> to vector<1x2x128xf32>
    tpu.vector_store %arg13[%c6_160, %c0_161, %c0_162], %488 {strides = array<i32>} : memref<8x2x128xf32, #tpu.memory_space<vmem>>, vector<1x2x128xf32>,
    %cst_163 = arith.constant -1.000000e+30 : f32
    %489 = vector.broadcast %cst_163 : f32 to vector<2x128xf32>
    %490 = arith.select %194, %485, %489 : vector<2x128xi1>, vector<2x128xf32>
    %cst_164 = arith.constant dense<0xFF800000> : vector<2xf32>
    %491 = vector.multi_reduction <maximumf>, %490, %cst_164 [1] : vector<2x128xf32> to vector<2xf32>
    %492 = vector.shape_cast %491 : vector<2xf32> to vector<2x1xf32>
    %493 = vector.broadcast %492 : vector<2x1xf32> to vector<2x128xf32>
    %494 = arith.cmpf oeq, %490, %493 : vector<2x128xf32>
    %cst_165 = arith.constant 1.280000e+02 : f32
    %495 = vector.broadcast %cst_165 : f32 to vector<2x128xf32>
    %496 = arith.select %494, %192, %495 : vector<2x128xi1>, vector<2x128xf32>
    %cst_166 = arith.constant dense<0x7F800000> : vector<2xf32>
    %497 = vector.multi_reduction <minimumf>, %496, %cst_166 [1] : vector<2x128xf32> to vector<2xf32>
    %498 = vector.shape_cast %497 : vector<2xf32> to vector<2x1xf32>
    %499 = vector.broadcast %498 : vector<2x1xf32> to vector<2x128xf32>
    %500 = arith.cmpf oeq, %192, %499 : vector<2x128xf32>
    %501 = arith.extui %500 : vector<2x128xi1> to vector<2x128xi32>
    %502 = arith.sitofp %501 : vector<2x128xi32> to vector<2x128xf32>
    %c6_167 = arith.constant 6 : index
    %503 = memref.load %arg1[%c6_167] : memref<8xi32, #tpu.memory_space<smem>>
    %c0_i32_168 = arith.constant 0 : i32
    %504 = arith.cmpi ne, %503, %c0_i32_168 : i32
    %505 = arith.extui %504 : i1 to i32
    %506 = arith.sitofp %505 : i32 to f32
    %c6_169 = arith.constant 6 : index
    %c0_170 = arith.constant 0 : index
    %c0_171 = arith.constant 0 : index
    %507 = vector.load %arg12[%c6_169, %c0_170, %c0_171] : memref<8x2x128xf32, #tpu.memory_space<vmem>>, vector<1x2x128xf32>
    %508 = vector.shape_cast %507 : vector<1x2x128xf32> to vector<2x128xf32>
    %509 = vector.broadcast %506 : f32 to vector<2x128xf32>
    %510 = arith.mulf %509, %508 : vector<2x128xf32>
    %cst_172 = arith.constant 1.000000e+00 : f32
    %511 = arith.subf %cst_172, %506 : f32
    %512 = vector.broadcast %511 : f32 to vector<2x128xf32>
    %513 = arith.mulf %512, %502 : vector<2x128xf32>
    %514 = arith.addf %510, %513 : vector<2x128xf32>
    %cst_173 = arith.constant dense<0.000000e+00> : vector<2x16xf32>
    %515 = tpu.matmul %514, %3, %cst_173 {dimension_numbers = #tpu.dot_dimension_numbers<[1], [0], [0], [1], [0, 0, 1, 1], [], []>} : vector<2x128xf32>, vector<128x16xf32>, vector<2x16xf32> -> vector<2x16xf32>
    %cst_174 = arith.constant dense<0.000000e+00> : vector<2x128xf32>
    %516 = tpu.matmul %515, %4, %cst_174 {dimension_numbers = #tpu.dot_dimension_numbers<[1], [0], [0], [1], [0, 0, 1, 1], [], []>} : vector<2x16xf32>, vector<16x128xf32>, vector<2x128xf32> -> vector<2x128xf32>
    %cst_175 = arith.constant dense<0.000000e+00> : vector<2x128xf32>
    %517 = tpu.matmul %482, %5, %cst_175 {dimension_numbers = #tpu.dot_dimension_numbers<[1], [0], [0], [1], [0, 0, 1, 1], [], []>} : vector<2x32xf32>, vector<32x128xf32>, vector<2x128xf32> -> vector<2x128xf32>
    %518 = arith.addf %516, %517 : vector<2x128xf32>
    %519 = vector.broadcast %6 : vector<1x128xf32> to vector<2x128xf32>
    %520 = arith.addf %518, %519 : vector<2x128xf32>
    %521 = arith.negf %520 : vector<2x128xf32>
    %522 = math.exp %521 : vector<2x128xf32>
    %cst_176 = arith.constant 1.000000e+00 : f32
    %523 = vector.broadcast %cst_176 : f32 to vector<2x128xf32>
    %524 = arith.addf %523, %522 : vector<2x128xf32>
    %525 = arith.divf %523, %524 : vector<2x128xf32>
    %526 = math.tanh %520 : vector<2x128xf32>
    %527 = vector.extract_strided_slice %525 {offsets = [0, 0], sizes = [2, 32], strides = [1, 1]} : vector<2x128xf32> to vector<2x32xf32>
    %528 = vector.extract_strided_slice %525 {offsets = [0, 32], sizes = [2, 32], strides = [1, 1]} : vector<2x128xf32> to vector<2x32xf32>
    %529 = vector.extract_strided_slice %526 {offsets = [0, 64], sizes = [2, 32], strides = [1, 1]} : vector<2x128xf32> to vector<2x32xf32>
    %530 = vector.extract_strided_slice %525 {offsets = [0, 96], sizes = [2, 32], strides = [1, 1]} : vector<2x128xf32> to vector<2x32xf32>
    %531 = arith.mulf %528, %480 : vector<2x32xf32>
    %532 = arith.mulf %527, %529 : vector<2x32xf32>
    %533 = arith.addf %531, %532 : vector<2x32xf32>
    %534 = math.tanh %533 : vector<2x32xf32>
    %535 = arith.mulf %530, %534 : vector<2x32xf32>
    %cst_177 = arith.constant dense<0.000000e+00> : vector<2x128xf32>
    %536 = tpu.matmul %535, %7, %cst_177 {dimension_numbers = #tpu.dot_dimension_numbers<[1], [0], [0], [1], [0, 0, 1, 1], [], []>} : vector<2x32xf32>, vector<32x128xf32>, vector<2x128xf32> -> vector<2x128xf32>
    %537 = vector.broadcast %8 : vector<1x128xf32> to vector<2x128xf32>
    %538 = arith.addf %536, %537 : vector<2x128xf32>
    %c7_178 = arith.constant 7 : index
    %c0_179 = arith.constant 0 : index
    %c0_180 = arith.constant 0 : index
    %539 = vector.load %arg13[%c7_178, %c0_179, %c0_180] : memref<8x2x128xf32, #tpu.memory_space<vmem>>, vector<1x2x128xf32>
    %540 = vector.shape_cast %539 : vector<1x2x128xf32> to vector<2x128xf32>
    %541 = vector.shape_cast %538 : vector<2x128xf32> to vector<1x2x128xf32>
    tpu.vector_store %arg13[%c7_178, %c0_179, %c0_180], %541 {strides = array<i32>} : memref<8x2x128xf32, #tpu.memory_space<vmem>>, vector<1x2x128xf32>,
    return
  }
  func.func @transform_0(%arg0: i32, %arg1: memref<8xi32, #tpu.memory_space<smem>>) -> (i32, i32, i32) {
    %c0_i32 = arith.constant 0 : i32
    %c0_i32_0 = arith.constant 0 : i32
    %c0_i32_1 = arith.constant 0 : i32
    %c0_i32_2 = arith.constant 0 : i32
    return %c0_i32, %c0_i32_0, %c0_i32_1 : i32, i32, i32
  }
  func.func @transform_1(%arg0: i32, %arg1: memref<8xi32, #tpu.memory_space<smem>>) -> (i32, i32) {
    %c0_i32 = arith.constant 0 : i32
    %c0_i32_0 = arith.constant 0 : i32
    %c0_i32_1 = arith.constant 0 : i32
    return %c0_i32, %c0_i32_0 : i32, i32
  }
  func.func @transform_2(%arg0: i32, %arg1: memref<8xi32, #tpu.memory_space<smem>>) -> (i32, i32) {
    %c0_i32 = arith.constant 0 : i32
    %c0_i32_0 = arith.constant 0 : i32
    %c0_i32_1 = arith.constant 0 : i32
    return %c0_i32, %c0_i32_0 : i32, i32
  }
  func.func @transform_3(%arg0: i32, %arg1: memref<8xi32, #tpu.memory_space<smem>>) -> (i32, i32) {
    %c0_i32 = arith.constant 0 : i32
    %c0_i32_0 = arith.constant 0 : i32
    %c0_i32_1 = arith.constant 0 : i32
    return %c0_i32, %c0_i32_0 : i32, i32
  }
  func.func @transform_4(%arg0: i32, %arg1: memref<8xi32, #tpu.memory_space<smem>>) -> (i32, i32) {
    %c0_i32 = arith.constant 0 : i32
    %c0_i32_0 = arith.constant 0 : i32
    %c0_i32_1 = arith.constant 0 : i32
    return %c0_i32, %c0_i32_0 : i32, i32
  }
  func.func @transform_5(%arg0: i32, %arg1: memref<8xi32, #tpu.memory_space<smem>>) -> (i32, i32) {
    %c0_i32 = arith.constant 0 : i32
    %c0_i32_0 = arith.constant 0 : i32
    %c0_i32_1 = arith.constant 0 : i32
    return %c0_i32, %c0_i32_0 : i32, i32
  }
  func.func @transform_6(%arg0: i32, %arg1: memref<8xi32, #tpu.memory_space<smem>>) -> (i32, i32) {
    %c0_i32 = arith.constant 0 : i32
    %c0_i32_0 = arith.constant 0 : i32
    %c0_i32_1 = arith.constant 0 : i32
    return %c0_i32, %c0_i32_0 : i32, i32
  }
  func.func @transform_7(%arg0: i32, %arg1: memref<8xi32, #tpu.memory_space<smem>>) -> (i32, i32) {
    %c0_i32 = arith.constant 0 : i32
    %c0_i32_0 = arith.constant 0 : i32
    %c0_i32_1 = arith.constant 0 : i32
    return %c0_i32, %c0_i32_0 : i32, i32
  }
  func.func @transform_8(%arg0: i32, %arg1: memref<8xi32, #tpu.memory_space<smem>>) -> (i32, i32) {
    %c0_i32 = arith.constant 0 : i32
    %c0_i32_0 = arith.constant 0 : i32
    %c0_i32_1 = arith.constant 0 : i32
    return %c0_i32, %c0_i32_0 : i32, i32
  }
  func.func @transform_9(%arg0: i32, %arg1: memref<8xi32, #tpu.memory_space<smem>>) -> (i32, i32) {
    %c0_i32 = arith.constant 0 : i32
    %c0_i32_0 = arith.constant 0 : i32
    %c0_i32_1 = arith.constant 0 : i32
    return %c0_i32, %c0_i32_0 : i32, i32
  }
  func.func @transform_10(%arg0: i32, %arg1: memref<8xi32, #tpu.memory_space<smem>>) -> (i32, i32, i32) {
    %c0_i32 = arith.constant 0 : i32
    %c0_i32_0 = arith.constant 0 : i32
    %c0_i32_1 = arith.constant 0 : i32
    %c0_i32_2 = arith.constant 0 : i32
    return %c0_i32, %c0_i32_0, %c0_i32_1 : i32, i32, i32
  }
  func.func @transform_11(%arg0: i32, %arg1: memref<8xi32, #tpu.memory_space<smem>>) -> (i32, i32, i32) {
    %c0_i32 = arith.constant 0 : i32
    %c0_i32_0 = arith.constant 0 : i32
    %c0_i32_1 = arith.constant 0 : i32
    %c0_i32_2 = arith.constant 0 : i32
    return %c0_i32, %c0_i32_0, %c0_i32_1 : i32, i32, i32
  }
}

</mosaic_0001>

<bundles_post_ra>
// kernel: seq2seq_forward.1
= control target key start
LH: loop header
LB: loop body
LE: loop exit
PB: predicated region body
PF: predicated region fallthrough
CT: control target
= control target key end

     0   :  { %s6105_s0 = inlined_call_operand.vmem [shape: s32[8], index: 0, kind: input, shape index: {}]   ;;  %s6106_s1 = inlined_call_operand.vmem [shape: f32[8,2,16], index: 1, kind: input, shape index: {}]   ;;  %s6107_s2 = inlined_call_operand.vmem [shape: f32[16,128], index: 2, kind: input, shape index: {}]   ;;  %s6108_s3 = inlined_call_operand.vmem [shape: f32[32,128], index: 3, kind: input, shape index: {}]   ;;  %s6109_s4 = inlined_call_operand.vmem [shape: f32[1,128], index: 4, kind: input, shape index: {}]   ;;  %s6110_s5 = inlined_call_operand.vmem [shape: f32[128,16], index: 5, kind: input, shape index: {}]   ;;  %s6111_s6 = inlined_call_operand.vmem [shape: f32[16,128], index: 6, kind: input, shape index: {}]   ;;  %s6112_s7 = inlined_call_operand.vmem [shape: f32[32,128], index: 7, kind: input, shape index: {}]   ;;  %s6113_s8 = inlined_call_operand.vmem [shape: f32[1,128], index: 8, kind: input, shape index: {}]   ;;  %s6114_s9 = inlined_call_operand.vmem [shape: f32[32,128], index: 9, kind: input, shape index: {}]   ;;  %s6115_s10 = inlined_call_operand.vmem [shape: f32[1,128], index: 10, kind: input, shape index: {}]   ;;  %s6116_s11 = inlined_call_operand.vmem [shape: f32[8,2,128], index: 11, kind: input, shape index: {}]   ;;  %s6117_s12 = inlined_call_operand.vmem [shape: f32[8,2,128], index: 12, kind: output, shape index: {}]  }
   0x1   :  { %s17_s23 = sshll.u32 %s6105_s0, 4  ;;  %s18_s23 = int_to_ptr.vmem [resolvable:$true] %s17_s23 }
   0x2   :  { %s5287_s24 = scalar_lea.vmem %s18_s23, 16  ;;  %p5292_p1 = scmp.lt.s32.totalorder %s18_s23, %s18_s23 }
   0x3   :  { %p5288_p0 = scmp.ne.s32.totalorder %s18_s23, %s5287_s24  ;;  %p5293_p2 = scmp.lt.s32.totalorder %s5287_s24, %s5287_s24 }
   0x5   :  { %p5294_p3 = por %p5293_p2, %p5292_p1 }
   0x7   :  { %p5295_p4 = pnand %p5294_p3, %p5288_p0 }
   0x9   :  { %5298 = shalt.err (!%p5295_p4)  }
   0xa   :  { %s5301_s25 = smov [#allocation3]  }
   0xb   :  { %20 = dma.vmem_to_smem %s18_s23, 16, %s5301_s25, [#allocation2] }
   0xc   :  { %5299 = dma.done.wait [#allocation2], 16 }
   0xd   :  { %5300 = vsyncadd [#allocation2], 4294967280 }
   0xe   :  { %22 = sfence }
   0xf   :  { %v47_v0 = vld [vmem:[%s6108_s3] sm:$0xff]  ;;  %v48_v1 = vld [vmem:[%s6108_s3 + $0x8] sm:$0xff]  ;;  %v49_v2 = vld [vmem:[%s6108_s3 + $0x10] sm:$0xff]  ;;  %v5302_v3 = vmov 0.0|0.0   ;;  %vm5303_vm0 = vmmov 0   ;;  %v5304_v6 = vmov 0.0  }
  0x10   :  { %4814 = vmatprep.subr.bf16.mxu1 %v5302_v3  ;;  %v5385_v4 = vpack.c.bf16 %v48_v1, %v47_v0  ;;  %v50_v5 = vld [vmem:[%s6108_s3 + $0x18] sm:$0xff]  ;;  %4230 = vmatprep.mubr.msk.f32.mxu1 %vm5303_vm0, %v5304_v6  ;;  %1485 = vst [vmem:[%s6117_s12] sm:$0x3] %v5304_v6  ;;  %v45_v7 = vld [vmem:[%s6107_s2] sm:$0xff]  ;;  %v46_v8 = vld [vmem:[%s6107_s2 + $0x8] sm:$0xff]  ;;  %vm155_vm1 = vcmask 130048   ;;  %s5305_s23 = smov 64  }
  0x11   :  { %v5402_v9 = vpack.c.bf16 %v46_v8, %v45_v7  ;;  %4829 = vmatprep.subr.bf16.mxu0 %v5302_v3  ;;  %4255 = vmatprep.mubr.msk.f32.mxu0 %vm5303_vm0, %v5304_v6  ;;  %v5408_v10 = vpack.c.bf16 %v50_v5, %v49_v2  ;;  %v80_v11 = vld [vmem:[%s6106_s1] sm:$0x3]  ;;  %v3865_v30 = vld [vmem:[%s6106_s1 + $0x2] sm:$0x3]  ;;  %vm81_vm2 = vcmask 261120   ;;  %vm1824_vm4 = vcmask 1041408  }
  0x12   :  { %4816 = vmatpush3.bf16.msra.mxu1 %v5385_v4  ;;  %v5433_v14 = vld [vmem:[%s6109_s4] ss:$0 sm:$0xff]  ;;  %s5306_s4 = smov 32   ;;  %v3869_v51 = vld [vmem:[%s6106_s1 + $0x4] sm:$0x3]  ;;  %s3901_s0 = sld [smem:[#allocation3 + $0x1]] }
  0x13   :  { %4817 = vmatprep.subr.bf16.mxu1 %v5302_v3  ;;  %4831 = vmatpush3.bf16.msra.mxu0 %v5402_v9  ;;  %s3909_s18 = sld [smem:[#allocation3 + $0x2]]  ;;  %s3917_s22 = sld [smem:[#allocation3 + $0x3]] }
  0x14   :  { %4832 = vmatprep.subr.bf16.mxu0 %v5302_v3  ;;  %s3941_s21 = sld [smem:[#allocation3 + $0x6]] }
  0x16   :  { %4819 = vmatpush3.bf16.msra.mxu1 %v5408_v10  ;;  %4256 = vmatmul.mubr.msk.f32.vlgmr.msra.gmra.mrb[0].mxu0 %vm155_vm1, %v3865_v30 }
  0x17   :  { %4820 = vmatprep.subr.bf16.mxu1 %v5302_v3  ;;  %4834 = vmatpush3.bf16.msra.mxu0 %v5385_v4 }
  0x18   :  { %4266 = vmatprep.mubr.msk.f32.mxu0 %vm5303_vm0, %v5304_v6  ;;  %4835 = vmatprep.subr.bf16.mxu0 %v5302_v3  ;;  %p1837_p5 = scmp.ne.s32.totalorder %s3901_s0, 0 }
  0x19   :  { %4231 = vmatmul.mubr.f32.vlgmr.msra.gmra.mrb[0].mxu1 %v5304_v6  ;;  %p2176_p6 = scmp.ne.s32.totalorder %s3909_s18, 0  ;;  %p2515_p7 = scmp.ne.s32.totalorder %s3917_s22, 0 }
  0x1a   :  { %4822 = vmatpush3.bf16.msra.mxu1 %v5402_v9  ;;  %4237 = vmatprep.mubr.msk.f32.mxu1 %vm5303_vm0, %v5304_v6  ;;  %s1838_s30 = scalar_select %p1837_p5, 1, 0 }
  0x1b   :  { %4823 = vmatprep.subr.bf16.mxu1 %v5302_v3  ;;  %4837 = vmatpush3.bf16.msra.mxu0 %v5408_v10  ;;  %s2516_s24 = scalar_select %p2515_p7, 1, 0 }
  0x1c   :  { %4847 = vmatprep.subr.bf16.mxu0 %v5302_v3  ;;  %s1839_s13 = scvt.s32.f32 %s1838_s30  ;;  %p3532_p10 = scmp.ne.s32.totalorder %s3941_s21, 0 }
  0x1d   :  { %4238 = vmatmul.mubr.msk.f32.vlgmr.msra.gmra.mrb[2].mxu1 %vm155_vm1, %v80_v11  ;;  %s2517_s25 = scvt.s32.f32 %s2516_s24 }
  0x1e   :  { %4825 = vmatpush3.bf16.msra.mxu1 %v5385_v4  ;;  %4248 = vmatprep.mubr.msk.f32.mxu1 %vm5303_vm0, %v5304_v6  ;;  %s1844_s14 = ssub.f32 1.0, %s1839_s13 }
  0x1f   :  { %4826 = vmatprep.subr.bf16.mxu1 %v5302_v3  ;;  %s2522_s26 = ssub.f32 1.0, %s2517_s25 }
  0x20   :  { %s3533_s22 = scalar_select %p3532_p10, 1, 0 }
  0x22   :  { %4828 = vmatpush3.bf16.msra.mxu1 %v5408_v10  ;;  %s3534_s24 = scvt.s32.f32 %s3533_s22 }
  0x23   :  { %4838 = vmatprep.subr.bf16.mxu1 %v5302_v3 }
  0xe9   :  { %v406_v34 = vpop.f32.mrb[0].mxu0 }
  0xea   :  { %v4257_v35 = vpop.f32.mrb[1].mxu0 }
  0xeb   :  { %v3877_v35 = vld [vmem:[%s6106_s1 + $0x8] sm:$0x3] }
  0xec   :  { %v151_v12 = vpop.f32.mrb[0].mxu1 }
  0xed   :  { %v4232_v13 = vpop.f32.mrb[1].mxu1 }
  0xee   :  { %v3873_v13 = vld [vmem:[%s6106_s1 + $0x6] sm:$0x3] }
  0xf0   :  { %v225_v15 = vpop.f32.mrb[2].mxu1 }
  0xf1   :  { %v226_v16 = vadd.f32 %v225_v15, %v151_v12  ;;  %v4239_v17 = vpop.f32.mrb[3].mxu1 }
  0xf3   :  { %v235_v18 = vadd.f32 %v5433_v14, %v226_v16 }
  0xf5   :  { %5165 = vtanh.f32 %v235_v18  ;;  %v3864_v20 = vmul.f32 -1.442695, %v235_v18 }
  0xf7   :  { %5167 = vpow2.f32 %v3864_v20 }
  0xff   :  { %v5166_v19 = vpop.eup %5165 }
 0x100   :  { %245 = vrot.lane.b32.xlu0 %v5166_v19, %s5305_s23 }
 0x101   :  { %v5168_v21 = vpop.eup %5167 }
 0x102   :  { %v239_v22 = vadd.f32 1.0, %v5168_v21 }
 0x104   :  { %5169 = vrcp.f32 %v239_v22 }
 0x10e   :  { %v5170_v23 = vpop.eup %5169 }
 0x10f   :  { %v243_v26 = vmul.f32 0.0, %v5170_v23 }
 0x172   :  { %v246_v24 = vpop.permute.xlu0 %245 }
 0x173   :  { %v248_v25 = vmul.f32 %v5170_v23, %v246_v24 }
 0x175   :  { %250 = vrot.lane.b32.xlu0 %v248_v25, %s5306_s4 }
 0x1e7   :  { %v251_v27 = vpop.permute.xlu0 %250 }
 0x1e8   :  { %v253_v28 = vadd.f32 %v251_v27, %v243_v26 }
 0x1ea   :  { %5171 = vtanh.f32 %v253_v28 }
 0x1f4   :  { %v5172_v29 = vpop.eup %5171 }
 0x1f5   :  { %256 = vrot.lane.b32.xlu1 %v5172_v29, %s5305_s23 }
 0x267   :  { %v257_v31 = vpop.permute.xlu1 %256 }
 0x268   :  { %v259_v32 = vmul.f32 %v5170_v23, %v257_v31 }
 0x26a   :  { %263 = vrot.lane.b32.xlu1 %v259_v32, %s5306_s4 }
 0x2dc   :  { %v264_v33 = vpop.permute.xlu1 %263 }
 0x2dd   :  { %4249 = vmatmul.mubr.msk.f32.vlgmr.msra.gmra.mrb[4].mxu1 %vm81_vm2, %v264_v33 }
 0x2de   :  { %4840 = vmatpush3.bf16.msra.mxu1 %v5402_v9  ;;  %4273 = vmatprep.mubr.msk.f32.mxu1 %vm5303_vm0, %v5304_v6 }
 0x2df   :  { %4841 = vmatprep.subr.bf16.mxu1 %v5302_v3 }
 0x2e1   :  { %4274 = vmatmul.mubr.msk.f32.vlgmr.msra.gmra.mrb[6].mxu1 %vm155_vm1, %v3869_v51 }
 0x2e2   :  { %4843 = vmatpush3.bf16.msra.mxu1 %v5385_v4  ;;  %4284 = vmatprep.mubr.msk.f32.mxu1 %vm5303_vm0, %v5304_v6 }
 0x2e3   :  { %4844 = vmatprep.subr.bf16.mxu1 %v5302_v3 }
 0x2e6   :  { %4846 = vmatpush3.bf16.msra.mxu1 %v5408_v10 }
 0x2e7   :  { %4856 = vmatprep.subr.bf16.mxu1 %v5302_v3 }
 0x3b0   :  { %v333_v36 = vpop.f32.mrb[4].mxu1 }
 0x3b1   :  { %v407_v37 = vadd.f32 %v406_v34, %v333_v36  ;;  %v4250_v38 = vpop.f32.mrb[5].mxu1 }
 0x3b3   :  { %v410_v39 = vadd.f32 %v5433_v14, %v407_v37 }
 0x3b4   :  { %v581_v55 = vpop.f32.mrb[6].mxu1 }
 0x3b5   :  { %5173 = vtanh.f32 %v410_v39  ;;  %v3868_v41 = vmul.f32 -1.442695, %v410_v39  ;;  %v4275_v56 = vpop.f32.mrb[7].mxu1 }
 0x3b6   :  { %v3881_v56 = vld [vmem:[%s6106_s1 + $0xa] sm:$0x3] }
 0x3b7   :  { %5175 = vpow2.f32 %v3868_v41 }
 0x3bf   :  { %v5174_v40 = vpop.eup %5173 }
 0x3c0   :  { %420 = vrot.lane.b32.xlu0 %v5174_v40, %s5305_s23 }
 0x3c1   :  { %v5176_v42 = vpop.eup %5175 }
 0x3c2   :  { %v414_v43 = vadd.f32 1.0, %v5176_v42 }
 0x3c4   :  { %5177 = vrcp.f32 %v414_v43 }
 0x3ce   :  { %v5178_v44 = vpop.eup %5177 }
 0x3cf   :  { %v418_v47 = vmul.f32 %v5178_v44, %v253_v28 }
 0x432   :  { %v421_v45 = vpop.permute.xlu0 %420 }
 0x433   :  { %v423_v46 = vmul.f32 %v5178_v44, %v421_v45 }
 0x435   :  { %425 = vrot.lane.b32.xlu1 %v423_v46, %s5306_s4 }
 0x4a7   :  { %v426_v48 = vpop.permute.xlu1 %425 }
 0x4a8   :  { %v428_v49 = vadd.f32 %v426_v48, %v418_v47 }
 0x4aa   :  { %5179 = vtanh.f32 %v428_v49 }
 0x4b4   :  { %v5180_v50 = vpop.eup %5179 }
 0x4b5   :  { %431 = vrot.lane.b32.xlu0 %v5180_v50, %s5305_s23 }
 0x527   :  { %v432_v52 = vpop.permute.xlu0 %431 }
 0x528   :  { %v434_v53 = vmul.f32 %v5178_v44, %v432_v52 }
 0x52a   :  { %438 = vrot.lane.b32.xlu1 %v434_v53, %s5306_s4 }
 0x59c   :  { %v439_v54 = vpop.permute.xlu1 %438 }
 0x59d   :  { %4267 = vmatmul.mubr.msk.f32.vlgmr.msra.gmra.mrb[2].mxu0 %vm81_vm2, %v439_v54 }
 0x59e   :  { %4849 = vmatpush3.bf16.msra.mxu0 %v5402_v9  ;;  %4291 = vmatprep.mubr.msk.f32.mxu0 %vm5303_vm0, %v5304_v6 }
 0x59f   :  { %4850 = vmatprep.subr.bf16.mxu0 %v5302_v3 }
 0x5a1   :  { %4292 = vmatmul.mubr.msk.f32.vlgmr.msra.gmra.mrb[4].mxu0 %vm155_vm1, %v3873_v13 }
 0x5a2   :  { %4852 = vmatpush3.bf16.msra.mxu0 %v5385_v4  ;;  %4302 = vmatprep.mubr.msk.f32.mxu0 %vm5303_vm0, %v5304_v6 }
 0x5a3   :  { %4853 = vmatprep.subr.bf16.mxu0 %v5302_v3 }
 0x5a6   :  { %4855 = vmatpush3.bf16.msra.mxu0 %v5408_v10 }
 0x5a7   :  { %4865 = vmatprep.subr.bf16.mxu0 %v5302_v3 }
 0x670   :  { %v508_v57 = vpop.f32.mrb[2].mxu0 }
 0x671   :  { %v582_v58 = vadd.f32 %v581_v55, %v508_v57  ;;  %v4268_v59 = vpop.f32.mrb[3].mxu0 }
 0x673   :  { %v585_v60 = vadd.f32 %v5433_v14, %v582_v58 }
 0x674   :  { %v756_v18 = vpop.f32.mrb[4].mxu0 }
 0x675   :  { %5181 = vtanh.f32 %v585_v60  ;;  %v3872_v62 = vmul.f32 -1.442695, %v585_v60  ;;  %v4293_v19 = vpop.f32.mrb[5].mxu0 }
 0x676   :  { %v3885_v19 = vld [vmem:[%s6106_s1 + $0xc] sm:$0x3] }
 0x677   :  { %5183 = vpow2.f32 %v3872_v62 }
 0x67f   :  { %v5182_v61 = vpop.eup %5181 }
 0x680   :  { %595 = vrot.lane.b32.xlu0 %v5182_v61, %s5305_s23 }
 0x681   :  { %v5184_v63 = vpop.eup %5183 }
 0x682   :  { %v589_v0 = vadd.f32 1.0, %v5184_v63 }
 0x684   :  { %5185 = vrcp.f32 %v589_v0 }
 0x68e   :  { %v5186_v1 = vpop.eup %5185 }
 0x68f   :  { %v593_v7 = vmul.f32 %v5186_v1, %v428_v49 }
 0x6f2   :  { %v596_v2 = vpop.permute.xlu0 %595 }
 0x6f3   :  { %v598_v5 = vmul.f32 %v5186_v1, %v596_v2 }
 0x6f5   :  { %600 = vrot.lane.b32.xlu1 %v598_v5, %s5306_s4 }
 0x767   :  { %v601_v8 = vpop.permute.xlu1 %600 }
 0x768   :  { %v603_v11 = vadd.f32 %v601_v8, %v593_v7 }
 0x76a   :  { %5187 = vtanh.f32 %v603_v11 }
 0x774   :  { %v5188_v12 = vpop.eup %5187 }
 0x775   :  { %606 = vrot.lane.b32.xlu0 %v5188_v12, %s5305_s23 }
 0x7e7   :  { %v607_v15 = vpop.permute.xlu0 %606 }
 0x7e8   :  { %v609_v16 = vmul.f32 %v5186_v1, %v607_v15 }
 0x7ea   :  { %613 = vrot.lane.b32.xlu1 %v609_v16, %s5306_s4 }
 0x85c   :  { %v614_v17 = vpop.permute.xlu1 %613 }
 0x85d   :  { %4285 = vmatmul.mubr.msk.f32.vlgmr.msra.gmra.mrb[8].mxu1 %vm81_vm2, %v614_v17 }
 0x85e   :  { %4858 = vmatpush3.bf16.msra.mxu1 %v5402_v9  ;;  %4309 = vmatprep.mubr.msk.f32.mxu1 %vm5303_vm0, %v5304_v6 }
 0x85f   :  { %4859 = vmatprep.subr.bf16.mxu1 %v5302_v3 }
 0x861   :  { %4310 = vmatmul.mubr.msk.f32.vlgmr.msra.gmra.mrb[10].mxu1 %vm155_vm1, %v3877_v35 }
 0x862   :  { %4861 = vmatpush3.bf16.msra.mxu1 %v5385_v4  ;;  %4320 = vmatprep.mubr.msk.f32.mxu1 %vm5303_vm0, %v5304_v6 }
 0x863   :  { %4862 = vmatprep.subr.bf16.mxu1 %v5302_v3 }
 0x866   :  { %4864 = vmatpush3.bf16.msra.mxu1 %v5408_v10 }
 0x867   :  { %4874 = vmatprep.subr.bf16.mxu1 %v5302_v3 }
 0x930   :  { %v683_v20 = vpop.f32.mrb[8].mxu1 }
 0x931   :  { %v757_v21 = vadd.f32 %v756_v18, %v683_v20  ;;  %v4286_v22 = vpop.f32.mrb[9].mxu1 }
 0x933   :  { %v760_v23 = vadd.f32 %v5433_v14, %v757_v21 }
 0x934   :  { %v931_v39 = vpop.f32.mrb[10].mxu1 }
 0x935   :  { %5189 = vtanh.f32 %v760_v23  ;;  %v3876_v25 = vmul.f32 -1.442695, %v760_v23  ;;  %v4311_v40 = vpop.f32.mrb[11].mxu1 }
 0x937   :  { %5191 = vpow2.f32 %v3876_v25 }
 0x93f   :  { %v5190_v24 = vpop.eup %5189 }
 0x940   :  { %770 = vrot.lane.b32.xlu0 %v5190_v24, %s5305_s23 }
 0x941   :  { %v5192_v26 = vpop.eup %5191 }
 0x942   :  { %v764_v27 = vadd.f32 1.0, %v5192_v26 }
 0x944   :  { %5193 = vrcp.f32 %v764_v27 }
 0x94e   :  { %v5194_v28 = vpop.eup %5193 }
 0x94f   :  { %v768_v31 = vmul.f32 %v5194_v28, %v603_v11 }
 0x9b2   :  { %v771_v29 = vpop.permute.xlu0 %770 }
 0x9b3   :  { %v773_v30 = vmul.f32 %v5194_v28, %v771_v29 }
 0x9b5   :  { %775 = vrot.lane.b32.xlu1 %v773_v30, %s5306_s4 }
 0xa27   :  { %v776_v32 = vpop.permute.xlu1 %775 }
 0xa28   :  { %v778_v33 = vadd.f32 %v776_v32, %v768_v31 }
 0xa2a   :  { %5195 = vtanh.f32 %v778_v33 }
 0xa34   :  { %v5196_v34 = vpop.eup %5195 }
 0xa35   :  { %781 = vrot.lane.b32.xlu0 %v5196_v34, %s5305_s23 }
 0xaa7   :  { %v782_v36 = vpop.permute.xlu0 %781 }
 0xaa8   :  { %v784_v37 = vmul.f32 %v5194_v28, %v782_v36 }
 0xaaa   :  { %788 = vrot.lane.b32.xlu1 %v784_v37, %s5306_s4  ;;  %v3889_v37 = vld [vmem:[%s6106_s1 + $0xe] sm:$0x3]  ;;  %s2177_s1 = scalar_select %p2176_p6, 1, 0 }
 0xaac   :  { %s2178_s19 = scvt.s32.f32 %s2177_s1 }
 0xb1c   :  { %v789_v38 = vpop.permute.xlu1 %788 }
 0xb1d   :  { %4303 = vmatmul.mubr.msk.f32.vlgmr.msra.gmra.mrb[6].mxu0 %vm81_vm2, %v789_v38 }
 0xb1e   :  { %4867 = vmatpush3.bf16.msra.mxu0 %v5402_v9  ;;  %4327 = vmatprep.mubr.msk.f32.mxu0 %vm5303_vm0, %v5304_v6 }
 0xb1f   :  { %4868 = vmatprep.subr.bf16.mxu0 %v5302_v3 }
 0xb21   :  { %4328 = vmatmul.mubr.msk.f32.vlgmr.msra.gmra.mrb[8].mxu0 %vm155_vm1, %v3881_v56 }
 0xb22   :  { %4870 = vmatpush3.bf16.msra.mxu0 %v5385_v4  ;;  %4338 = vmatprep.mubr.msk.f32.mxu0 %vm5303_vm0, %v5304_v6 }
 0xb23   :  { %4871 = vmatprep.subr.bf16.mxu0 %v5302_v3 }
 0xb26   :  { %4873 = vmatpush3.bf16.msra.mxu0 %v5408_v10 }
 0xb27   :  { %4883 = vmatprep.subr.bf16.mxu0 %v5302_v3 }
 0xbf0   :  { %v858_v41 = vpop.f32.mrb[6].mxu0 }
 0xbf1   :  { %v932_v42 = vadd.f32 %v931_v39, %v858_v41  ;;  %v4304_v43 = vpop.f32.mrb[7].mxu0 }
 0xbf3   :  { %v935_v44 = vadd.f32 %v5433_v14, %v932_v42 }
 0xbf4   :  { %v1106_v60 = vpop.f32.mrb[8].mxu0 }
 0xbf5   :  { %5197 = vtanh.f32 %v935_v44  ;;  %v3880_v46 = vmul.f32 -1.442695, %v935_v44  ;;  %v4329_v61 = vpop.f32.mrb[9].mxu0 }
 0xbf7   :  { %5199 = vpow2.f32 %v3880_v46 }
 0xbff   :  { %v5198_v45 = vpop.eup %5197 }
 0xc00   :  { %945 = vrot.lane.b32.xlu0 %v5198_v45, %s5305_s23 }
 0xc01   :  { %v5200_v47 = vpop.eup %5199 }
 0xc02   :  { %v939_v48 = vadd.f32 1.0, %v5200_v47 }
 0xc04   :  { %5201 = vrcp.f32 %v939_v48 }
 0xc0e   :  { %v5202_v49 = vpop.eup %5201 }
 0xc0f   :  { %v943_v52 = vmul.f32 %v5202_v49, %v778_v33 }
 0xc72   :  { %v946_v50 = vpop.permute.xlu0 %945 }
 0xc73   :  { %v948_v51 = vmul.f32 %v5202_v49, %v946_v50 }
 0xc75   :  { %950 = vrot.lane.b32.xlu1 %v948_v51, %s5306_s4  ;;  %v52_v51 = vld [vmem:[%s6110_s5] sm:$0xff] }
 0xce7   :  { %v951_v53 = vpop.permute.xlu1 %950 }
 0xce8   :  { %v953_v54 = vadd.f32 %v951_v53, %v943_v52  ;;  %v53_v52 = vld [vmem:[%s6110_s5 + $0x8] sm:$0xff] }
 0xce9   :  { %v5583_v53 = vpack.c.bf16 %v53_v52, %v52_v51  ;;  %v75_v52 = vld [vmem:[%s6114_s9] sm:$0xff] }
 0xcea   :  { %5203 = vtanh.f32 %v953_v54 }
 0xcf4   :  { %v5204_v55 = vpop.eup %5203 }
 0xcf5   :  { %956 = vrot.lane.b32.xlu0 %v5204_v55, %s5305_s23 }
 0xd67   :  { %v957_v57 = vpop.permute.xlu0 %956 }
 0xd68   :  { %v959_v58 = vmul.f32 %v5202_v49, %v957_v57 }
 0xd6a   :  { %963 = vrot.lane.b32.xlu1 %v959_v58, %s5306_s4  ;;  %v56_v58 = vld [vmem:[%s6110_s5 + $0x20] sm:$0xff] }
 0xddc   :  { %v964_v59 = vpop.permute.xlu1 %963 }
 0xddd   :  { %4321 = vmatmul.mubr.msk.f32.vlgmr.msra.gmra.mrb[12].mxu1 %vm81_vm2, %v964_v59  ;;  %v57_v59 = vld [vmem:[%s6110_s5 + $0x28] sm:$0xff] }
 0xdde   :  { %4876 = vmatpush3.bf16.msra.mxu1 %v5402_v9  ;;  %4345 = vmatprep.mubr.msk.f32.mxu1 %vm5303_vm0, %v5304_v6  ;;  %v5600_v61 = vpack.c.bf16 %v57_v59, %v56_v58 }
 0xddf   :  { %4877 = vmatprep.subr.bf16.mxu1 %v5302_v3 }
 0xde1   :  { %4346 = vmatmul.mubr.msk.f32.vlgmr.msra.gmra.mrb[14].mxu1 %vm155_vm1, %v3885_v19  ;;  %v1490_v19 = vld [vmem:[%s6116_s11] sm:$0x3] }
 0xde2   :  { %4879 = vmatpush3.bf16.msra.mxu1 %v5385_v4  ;;  %4356 = vmatprep.mubr.msk.f32.mxu1 %vm5303_vm0, %v5304_v6 }
 0xde3   :  { %4880 = vmatprep.subr.bf16.mxu1 %v5302_v3 }
 0xde6   :  { %4882 = vmatpush3.bf16.msra.mxu1 %v5408_v10 }
 0xde7   :  { %4910 = vmatprep.subr.bf16.mxu1 %v5302_v3 }
 0xeb0   :  { %v1033_v62 = vpop.f32.mrb[12].mxu1 }
 0xeb1   :  { %v1107_v63 = vadd.f32 %v1106_v60, %v1033_v62  ;;  %v4322_v0 = vpop.f32.mrb[13].mxu1  ;;  %v58_v62 = vld [vmem:[%s6110_s5 + $0x30] sm:$0xff] }
 0xeb3   :  { %v1110_v1 = vadd.f32 %v5433_v14, %v1107_v63  ;;  %v59_v63 = vld [vmem:[%s6110_s5 + $0x38] sm:$0xff] }
 0xeb4   :  { %v1281_v4 = vpop.f32.mrb[14].mxu1  ;;  %v5611_v0 = vpack.c.bf16 %v59_v63, %v58_v62 }
 0xeb5   :  { %5205 = vtanh.f32 %v1110_v1  ;;  %v3884_v5 = vmul.f32 -1.442695, %v1110_v1  ;;  %v4347_v23 = vpop.f32.mrb[15].mxu1  ;;  %v60_v1 = vld [vmem:[%s6110_s5 + $0x40] sm:$0xff] }
 0xeb6   :  { %v71_v23 = vld [vmem:[%s6112_s7 + $0x8] sm:$0xff] }
 0xeb7   :  { %5207 = vpow2.f32 %v3884_v5 }
 0xebf   :  { %v5206_v2 = vpop.eup %5205 }
 0xec0   :  { %1120 = vrot.lane.b32.xlu0 %v5206_v2, %s5305_s23  ;;  %v61_v2 = vld [vmem:[%s6110_s5 + $0x48] sm:$0xff] }
 0xec1   :  { %v5208_v7 = vpop.eup %5207  ;;  %v5620_v5 = vpack.c.bf16 %v61_v2, %v60_v1  ;;  %v1486_v1 = vlaneseq }
 0xec2   :  { %v1114_v8 = vadd.f32 1.0, %v5208_v7  ;;  %v62_v7 = vld [vmem:[%s6110_s5 + $0x50] sm:$0xff] }
 0xec3   :  { %v5760_v2 = vand.u32 127, %v1486_v1 }
 0xec4   :  { %5209 = vrcp.f32 %v1114_v8  ;;  %v63_v8 = vld [vmem:[%s6110_s5 + $0x58] sm:$0xff] }
 0xec5   :  { %vm1489_vm3 = vcmp.lt.s32.totalorder %v5760_v2, 32 }
 0xece   :  { %v5210_v11 = vpop.eup %5209 }
 0xecf   :  { %v1118_v15 = vmul.f32 %v5210_v11, %v953_v54  ;;  %v55_v54 = vld [vmem:[%s6110_s5 + $0x18] sm:$0xff] }
 0xf32   :  { %v1121_v12 = vpop.permute.xlu0 %1120 }
 0xf33   :  { %v1123_v13 = vmul.f32 %v5210_v11, %v1121_v12  ;;  %v64_v12 = vld [vmem:[%s6110_s5 + $0x60] sm:$0xff] }
 0xf35   :  { %1125 = vrot.lane.b32.xlu1 %v1123_v13, %s5306_s4  ;;  %v65_v13 = vld [vmem:[%s6110_s5 + $0x68] sm:$0xff] }
 0xfa7   :  { %v1126_v16 = vpop.permute.xlu1 %1125 }
 0xfa8   :  { %v1128_v17 = vadd.f32 %v1126_v16, %v1118_v15  ;;  %v5640_v15 = vpack.c.bf16 %v65_v13, %v64_v12  ;;  %v66_v16 = vld [vmem:[%s6110_s5 + $0x70] sm:$0xff] }
 0xfaa   :  { %5211 = vtanh.f32 %v1128_v17 }
 0xfb4   :  { %v5212_v18 = vpop.eup %5211 }
 0xfb5   :  { %1131 = vrot.lane.b32.xlu0 %v5212_v18, %s5305_s23 }
0x1027   :  { %v1132_v20 = vpop.permute.xlu0 %1131 }
0x1028   :  { %v1134_v21 = vmul.f32 %v5210_v11, %v1132_v20  ;;  %v5630_v11 = vpack.c.bf16 %v63_v8, %v62_v7  ;;  %v5765_v7 = vld [vmem:[%s6115_s10] ss:$0 sm:$0xff] }
0x102a   :  { %1138 = vrot.lane.b32.xlu1 %v1134_v21, %s5306_s4 }
0x109c   :  { %v1139_v22 = vpop.permute.xlu1 %1138 }
0x109d   :  { %4339 = vmatmul.mubr.msk.f32.vlgmr.msra.gmra.mrb[10].mxu0 %vm81_vm2, %v1139_v22 }
0x109e   :  { %4885 = vmatpush3.bf16.msra.mxu0 %v5402_v9  ;;  %4363 = vmatprep.mubr.msk.f32.mxu0 %vm5303_vm0, %v5304_v6 }
0x109f   :  { %4886 = vmatprep.subr.bf16.mxu0 %v5302_v3 }
0x10a1   :  { %4364 = vmatmul.mubr.msk.f32.vlgmr.msra.gmra.mrb[12].mxu0 %vm155_vm1, %v3889_v37  ;;  %v5706_v37 = vld [vmem:[%s6113_s8] ss:$0 sm:$0xff] }
0x10a2   :  { %4398 = vmatprep.mubr.msk.f32.mxu0 %vm5303_vm0, %v5304_v6  ;;  %4888 = vmatpush3.bf16.msra.mxu0 %v5583_v53 }
0x10a3   :  { %4889 = vmatprep.subr.bf16.mxu0 %v5302_v3 }
0x1170   :  { %v1208_v24 = vpop.f32.mrb[10].mxu0 }
0x1171   :  { %v1282_v10 = vadd.f32 %v1281_v4, %v1208_v24  ;;  %v4340_v25 = vpop.f32.mrb[11].mxu0  ;;  %v70_v4 = vld [vmem:[%s6112_s7] sm:$0xff]  ;;  %v72_v24 = vld [vmem:[%s6112_s7 + $0x10] sm:$0xff] }
0x1172   :  { %v73_v25 = vld [vmem:[%s6112_s7 + $0x18] sm:$0xff]  ;;  %s3933_s7 = sld [smem:[#allocation3 + $0x5]] }
0x1173   :  { %v1285_v26 = vadd.f32 %v5433_v14, %v1282_v10  ;;  %v5670_v10 = vpack.c.bf16 %v71_v23, %v70_v4 }
0x1174   :  { %v1456_v41 = vpop.f32.mrb[12].mxu0 }
0x1175   :  { %5213 = vtanh.f32 %v1285_v26  ;;  %v3888_v28 = vmul.f32 -1.442695, %v1285_v26  ;;  %v4365_v42 = vpop.f32.mrb[13].mxu0  ;;  %v5676_v26 = vpack.c.bf16 %v73_v25, %v72_v24  ;;  %v3902_v24 = vld [vmem:[%s6116_s11 + $0x2] sm:$0x3]  ;;  %v1842_v25 = vstv %s1839_s13 }
0x1177   :  { %5215 = vpow2.f32 %v3888_v28 }
0x1178   :  { %p3193_p9 = scmp.ne.s32.totalorder %s3933_s7, 0 }
0x117a   :  { %s3194_s18 = scalar_select %p3193_p9, 1, 0 }
0x117c   :  { %s3195_s1 = scvt.s32.f32 %s3194_s18 }
0x117f   :  { %v5214_v27 = vpop.eup %5213 }
0x1180   :  { %1295 = vrot.lane.b32.xlu0 %v5214_v27, %s5305_s23 }
0x1181   :  { %v5216_v29 = vpop.eup %5215 }
0x1182   :  { %v1289_v9 = vadd.f32 1.0, %v5216_v29 }
0x1184   :  { %5217 = vrcp.f32 %v1289_v9 }
0x118e   :  { %v5218_v30 = vpop.eup %5217 }
0x118f   :  { %v1293_v33 = vmul.f32 %v5218_v30, %v1128_v17  ;;  %v67_v17 = vld [vmem:[%s6110_s5 + $0x78] sm:$0xff] }
0x1190   :  { %v5650_v18 = vpack.c.bf16 %v67_v17, %v66_v16 }
0x11f2   :  { %v1296_v31 = vpop.permute.xlu0 %1295 }
0x11f3   :  { %v1298_v32 = vmul.f32 %v5218_v30, %v1296_v31  ;;  %v68_v31 = vld [vmem:[%s6111_s6] sm:$0xff] }
0x11f5   :  { %1300 = vrot.lane.b32.xlu1 %v1298_v32, %s5306_s4  ;;  %v69_v32 = vld [vmem:[%s6111_s6 + $0x8] sm:$0xff]  ;;  %s2183_s6 = ssub.f32 1.0, %s2178_s19 }
0x1267   :  { %v1301_v34 = vpop.permute.xlu1 %1300 }
0x1268   :  { %v5558_v35 = vadd.f32 %v1301_v34, %v1293_v33  ;;  %v5693_v33 = vpack.c.bf16 %v69_v32, %v68_v31 }
0x126a   :  { %5219 = vtanh.f32 %v5558_v35 }
0x1274   :  { %v5220_v36 = vpop.eup %5219 }
0x1275   :  { %1306 = vrot.lane.b32.xlu0 %v5220_v36, %s5305_s23 }
0x12e7   :  { %v1307_v38 = vpop.permute.xlu0 %1306 }
0x12e8   :  { %v1309_v39 = vmul.f32 %v5218_v30, %v1307_v38 }
0x12ea   :  { %1313 = vrot.lane.b32.xlu1 %v1309_v39, %s5306_s4 }
0x135c   :  { %v1314_v40 = vpop.permute.xlu1 %1313 }
0x135d   :  { %4357 = vmatmul.mubr.msk.f32.vlgmr.msra.gmra.mrb[16].mxu1 %vm81_vm2, %v1314_v40 }
0x135e   :  { %4409 = vmatprep.mubr.msk.f32.mxu1 %vm5303_vm0, %v5304_v6  ;;  %4912 = vmatpush3.bf16.msra.mxu1 %v5670_v10 }
0x135f   :  { %4913 = vmatprep.subr.bf16.mxu1 %v5302_v3 }
0x1362   :  { %4915 = vmatpush3.bf16.msra.mxu1 %v5676_v26 }
0x1363   :  { %4916 = vmatprep.subr.bf16.mxu1 %v5302_v3 }
0x1430   :  { %v1383_v43 = vpop.f32.mrb[16].mxu1 }
0x1431   :  { %v1457_v44 = vadd.f32 %v1456_v41, %v1383_v43  ;;  %v4358_v45 = vpop.f32.mrb[17].mxu1 }
0x1433   :  { %v1460_v46 = vadd.f32 %v5433_v14, %v1457_v44  ;;  %v54_v14 = vld [vmem:[%s6110_s5 + $0x10] sm:$0xff]  ;;  %s3925_s5 = sld [smem:[#allocation3 + $0x4]] }
0x1434   :  { %v5589_v55 = vpack.c.bf16 %v55_v54, %v54_v14  ;;  %v76_v14 = vld [vmem:[%s6114_s9 + $0x8] sm:$0xff]  ;;  %v77_v54 = vld [vmem:[%s6114_s9 + $0x10] sm:$0xff] }
0x1435   :  { %5221 = vtanh.f32 %v1460_v46  ;;  %v3892_v48 = vmul.f32 -1.442695, %v1460_v46 }
0x1436   :  { %4891 = vmatpush3.bf16.msra.mxu0 %v5589_v55 }
0x1437   :  { %5223 = vpow2.f32 %v3892_v48  ;;  %4892 = vmatprep.subr.bf16.mxu0 %v5302_v3 }
0x1439   :  { %p2854_p8 = scmp.ne.s32.totalorder %s3925_s5, 0 }
0x143a   :  { %4894 = vmatpush3.bf16.msra.mxu0 %v5600_v61 }
0x143b   :  { %4895 = vmatprep.subr.bf16.mxu0 %v5302_v3  ;;  %s2855_s0 = scalar_select %p2854_p8, 1, 0 }
0x143d   :  { %s2856_s30 = scvt.s32.f32 %s2855_s0 }
0x143e   :  { %4897 = vmatpush3.bf16.msra.mxu0 %v5611_v0 }
0x143f   :  { %v5222_v47 = vpop.eup %5221  ;;  %4898 = vmatprep.subr.bf16.mxu0 %v5302_v3  ;;  %s2861_s13 = ssub.f32 1.0, %s2856_s30 }
0x1440   :  { %1470 = vrot.lane.b32.xlu0 %v5222_v47, %s5305_s23 }
0x1441   :  { %v5224_v49 = vpop.eup %5223 }
0x1442   :  { %v1464_v50 = vadd.f32 1.0, %v5224_v49  ;;  %4900 = vmatpush3.bf16.msra.mxu0 %v5620_v5 }
0x1443   :  { %4901 = vmatprep.subr.bf16.mxu0 %v5302_v3 }
0x1444   :  { %5225 = vrcp.f32 %v1464_v50 }
0x1446   :  { %4903 = vmatpush3.bf16.msra.mxu0 %v5630_v11 }
0x1447   :  { %4904 = vmatprep.subr.bf16.mxu0 %v5302_v3 }
0x144a   :  { %4906 = vmatpush3.bf16.msra.mxu0 %v5640_v15 }
0x144b   :  { %4907 = vmatprep.subr.bf16.mxu0 %v5302_v3 }
0x144e   :  { %v5226_v56 = vpop.eup %5225  ;;  %4909 = vmatpush3.bf16.msra.mxu0 %v5650_v18 }
0x144f   :  { %4949 = vmatprep.subr.bf16.mxu0 %v5302_v3  ;;  %v1468_v20 = vmul.f32 %v5226_v56, %v5558_v35 }
0x1451   :  { %4399 = vmatmul.mubr.f32.vlgmr.msra.gmra.mrb[14].mxu0 %v1490_v19 }
0x1452   :  { %4473 = vmatprep.mubr.msk.f32.mxu0 %vm5303_vm0, %v5304_v6  ;;  %4951 = vmatpush3.bf16.msra.mxu0 %v5670_v10 }
0x1453   :  { %4952 = vmatprep.subr.bf16.mxu0 %v5302_v3 }
0x1456   :  { %4954 = vmatpush3.bf16.msra.mxu0 %v5676_v26 }
0x1457   :  { %4955 = vmatprep.subr.bf16.mxu0 %v5302_v3 }
0x14b2   :  { %v1471_v57 = vpop.permute.xlu0 %1470 }
0x14b3   :  { %v1473_v60 = vmul.f32 %v5226_v56, %v1471_v57  ;;  %v78_v57 = vld [vmem:[%s6114_s9 + $0x18] sm:$0xff] }
0x14b4   :  { %v5729_v58 = vpack.c.bf16 %v78_v57, %v77_v54 }
0x14b5   :  { %1475 = vrot.lane.b32.xlu1 %v1473_v60, %s5306_s4 }
0x1524   :  { %v1557_v28 = vpop.f32.mrb[14].mxu0 }
0x1525   :  { %v4400_v29 = vpop.f32.mrb[15].mxu0 }
0x1526   :  { %v1843_v29 = vmul.f32 %v3902_v24, %v1842_v25 }
0x1527   :  { %v1476_v21 = vpop.permute.xlu1 %1475 }
0x1528   :  { %v1478_v22 = vadd.f32 %v1476_v21, %v1468_v20  ;;  %v5776_v21 = vcvt.s32.f32 %v5760_v2  ;;  %v3942_v2 = vld [vmem:[%s6116_s11 + $0xc] sm:$0x3] }
0x152a   :  { %5227 = vtanh.f32 %v1478_v22 }
0x1534   :  { %v5228_v27 = vpop.eup %5227 }
0x1535   :  { %1481 = vrot.lane.b32.xlu0 %v5228_v27, %s5305_s23  ;;  %v1845_v27 = vstv %s1844_s14 }
0x15a7   :  { %v1482_v9 = vpop.permute.xlu0 %1481 }
0x15a8   :  { %v1484_v30 = vmul.f32 %v5226_v56, %v1482_v9  ;;  %v5723_v56 = vpack.c.bf16 %v76_v14, %v75_v52 }
0x15aa   :  { %1562 = vrot.lane.b32.xlu1 %v1484_v30, %s5306_s4 }
0x161c   :  { %v1563_v34 = vpop.permute.xlu1 %1562 }
0x161d   :  { %4410 = vmatmul.mubr.msk.f32.vlgmr.msra.gmra.mrb[18].mxu1 %vm81_vm2, %v1563_v34 }
0x161e   :  { %4918 = vmatpush3.bf16.msra.mxu1 %v5693_v33  ;;  %4416 = vmatprep.mubr.msk.f32.mxu1 %vm5303_vm0, %v5304_v6 }
0x161f   :  { %4919 = vmatprep.subr.bf16.mxu1 %v5302_v3 }
0x1621   :  { %4417 = vmatmul.mubr.msk.f32.vlgmr.msra.gmra.mrb[20].mxu1 %vm155_vm1, %v1557_v28 }
0x1622   :  { %4427 = vmatprep.mubr.msk.f32.mxu1 %vm5303_vm0, %v5304_v6  ;;  %4921 = vmatpush3.bf16.msra.mxu1 %v5723_v56 }
0x1623   :  { %4922 = vmatprep.subr.bf16.mxu1 %v5302_v3 }
0x1626   :  { %4924 = vmatpush3.bf16.msra.mxu1 %v5729_v58 }
0x1627   :  { %4925 = vmatprep.subr.bf16.mxu1 %v5302_v3 }
0x16f0   :  { %v1632_v35 = vpop.f32.mrb[18].mxu1 }
0x16f1   :  { %v4411_v36 = vpop.f32.mrb[19].mxu1 }
0x16f4   :  { %v1705_v38 = vpop.f32.mrb[20].mxu1 }
0x16f5   :  { %v1706_v39 = vadd.f32 %v1705_v38, %v1632_v35  ;;  %v4418_v40 = vpop.f32.mrb[21].mxu1 }
0x16f7   :  { %v1715_v41 = vadd.f32 %v5706_v37, %v1706_v39 }
0x16f9   :  { %5229 = vtanh.f32 %v1715_v41  ;;  %v3896_v43 = vmul.f32 -1.442695, %v1715_v41 }
0x16fb   :  { %5231 = vpow2.f32 %v3896_v43 }
0x1703   :  { %v5230_v42 = vpop.eup %5229 }
0x1704   :  { %1725 = vrot.lane.b32.xlu0 %v5230_v42, %s5305_s23 }
0x1705   :  { %v5232_v44 = vpop.eup %5231 }
0x1706   :  { %v1719_v45 = vadd.f32 1.0, %v5232_v44 }
0x1708   :  { %5233 = vrcp.f32 %v1719_v45 }
0x1712   :  { %v5234_v46 = vpop.eup %5233 }
0x1713   :  { %v1723_v49 = vmul.f32 %v5234_v46, %v1478_v22 }
0x1776   :  { %v1726_v47 = vpop.permute.xlu0 %1725 }
0x1777   :  { %v1728_v48 = vmul.f32 %v5234_v46, %v1726_v47 }
0x1779   :  { %1730 = vrot.lane.b32.xlu1 %v1728_v48, %s5306_s4 }
0x17eb   :  { %v1731_v50 = vpop.permute.xlu1 %1730 }
0x17ec   :  { %v5711_v51 = vadd.f32 %v1731_v50, %v1723_v49 }
0x17ee   :  { %5235 = vtanh.f32 %v5711_v51 }
0x17f8   :  { %v5236_v59 = vpop.eup %5235 }
0x17f9   :  { %1736 = vrot.lane.b32.xlu0 %v5236_v59, %s5305_s23 }
0x186b   :  { %v1737_v60 = vpop.permute.xlu0 %1736 }
0x186c   :  { %v1739_v62 = vmul.f32 %v5234_v46, %v1737_v60 }
0x186e   :  { %1747 = vrot.lane.b32.xlu1 %v1739_v62, %s5306_s4 }
0x18e0   :  { %v1748_v63 = vpop.permute.xlu1 %1747 }
0x18e1   :  { %4428 = vmatmul.mubr.msk.f32.vlgmr.msra.gmra.mrb[22].mxu1 %vm81_vm2, %v1748_v63  ;;  %4474 = vmatmul.mubr.msk.f32.vlgmr.msra.gmra.mrb[16].mxu0 %vm81_vm2, %v1748_v63 }
0x18e2   :  { %4927 = vmatpush3.bf16.msra.mxu1 %v5583_v53  ;;  %4462 = vmatprep.mubr.msk.f32.mxu1 %vm5303_vm0, %v5304_v6 }
0x18e3   :  { %4928 = vmatprep.subr.bf16.mxu1 %v5302_v3  ;;  %4957 = vmatpush3.bf16.msra.mxu0 %v5693_v33 }
0x18e4   :  { %4480 = vmatprep.mubr.msk.f32.mxu0 %vm5303_vm0, %v5304_v6  ;;  %4958 = vmatprep.subr.bf16.mxu0 %v5302_v3 }
0x18e6   :  { %4930 = vmatpush3.bf16.msra.mxu1 %v5589_v55 }
0x18e7   :  { %4931 = vmatprep.subr.bf16.mxu1 %v5302_v3 }
0x18ea   :  { %4933 = vmatpush3.bf16.msra.mxu1 %v5600_v61 }
0x18eb   :  { %4934 = vmatprep.subr.bf16.mxu1 %v5302_v3 }
0x18ee   :  { %4936 = vmatpush3.bf16.msra.mxu1 %v5611_v0 }
0x18ef   :  { %4937 = vmatprep.subr.bf16.mxu1 %v5302_v3 }
0x18f2   :  { %4939 = vmatpush3.bf16.msra.mxu1 %v5620_v5 }
0x18f3   :  { %4940 = vmatprep.subr.bf16.mxu1 %v5302_v3 }
0x18f6   :  { %4942 = vmatpush3.bf16.msra.mxu1 %v5630_v11 }
0x18f7   :  { %4943 = vmatprep.subr.bf16.mxu1 %v5302_v3 }
0x18fa   :  { %4945 = vmatpush3.bf16.msra.mxu1 %v5640_v15 }
0x18fb   :  { %4946 = vmatprep.subr.bf16.mxu1 %v5302_v3 }
0x18fe   :  { %4948 = vmatpush3.bf16.msra.mxu1 %v5650_v18 }
0x18ff   :  { %4988 = vmatprep.subr.bf16.mxu1 %v5302_v3 }
0x19b4   :  { %v1817_v8 = vpop.f32.mrb[22].mxu1  ;;  %v1984_v12 = vpop.f32.mrb[16].mxu0 }
0x19b5   :  { %v1818_v13 = vadd.f32 %v5765_v7, %v1817_v8  ;;  %v4429_v16 = vpop.f32.mrb[23].mxu1  ;;  %v4475_v17 = vpop.f32.mrb[17].mxu0 }
0x19b6   :  { %v3910_v16 = vld [vmem:[%s6116_s11 + $0x4] sm:$0x3]  ;;  %v2181_v17 = vstv %s2178_s19  ;;  %s3200_s19 = ssub.f32 1.0, %s3195_s1 }
0x19b7   :  { %3899 = vst [vmem:[%s6117_s12 + $0x2] sm:$0x3] %v1818_v13  ;;  %v1823_v19 = vsel %vm1489_vm3, %v1818_v13, -1e+30 }
0x19b8   :  { %v1825_v20 = vsel %vm1824_vm4, %v1823_v19, -inf }
0x19b9   :  { %1826 = vmax.xlane.f32.xlu0 %v1825_v20 }
0x1a46   :  { %v1827_v22 = vpop.xlane.xlu0 %1826 }
0x1a47   :  { %vm1828_vm5 = vcmp.eq.f32.partialorder %v1823_v19, %v1827_v22  ;;  %v2184_v19 = vstv %s2183_s6  ;;  %v2182_v22 = vmul.f32 %v3910_v16, %v2181_v17 }
0x1a48   :  { %v1829_v4 = vsel %vm1828_vm5, %v5776_v21, 128.0 }
0x1a49   :  { %v1830_v23 = vsel %vm1824_vm4, %v1829_v4, inf }
0x1a4a   :  { %1831 = vmin.xlane.f32.xlu1 %v1830_v23 }
0x1ad7   :  { %v1832_v28 = vpop.xlane.xlu1 %1831 }
0x1ad8   :  { %vm1833_vm6 = vcmp.eq.f32.partialorder %v5776_v21, %v1832_v28 }
0x1ad9   :  { %v3900_v9 = vsel %vm1833_vm6, 1.0, %v5304_v6 }
0x1ada   :  { %v1846_v30 = vmul.f32 %v3900_v9, %v1845_v27 }
0x1adc   :  { %v1847_v31 = vadd.f32 %v1846_v30, %v1843_v29 }
0x1ade   :  { %4463 = vmatmul.mubr.f32.vlgmr.msra.gmra.mrb[24].mxu1 %v1847_v31 }
0x1adf   :  { %4990 = vmatpush3.bf16.msra.mxu1 %v5670_v10  ;;  %4537 = vmatprep.mubr.msk.f32.mxu1 %vm5303_vm0, %v5304_v6 }
0x1ae0   :  { %4991 = vmatprep.subr.bf16.mxu1 %v5302_v3 }
0x1ae3   :  { %4993 = vmatpush3.bf16.msra.mxu1 %v5676_v26 }
0x1ae4   :  { %4994 = vmatprep.subr.bf16.mxu1 %v5302_v3 }
0x1bb1   :  { %v1914_v32 = vpop.f32.mrb[24].mxu1 }
0x1bb2   :  { %v4464_v34 = vpop.f32.mrb[25].mxu1  ;;  %4481 = vmatmul.mubr.msk.f32.vlgmr.msra.gmra.mrb[18].mxu0 %vm155_vm1, %v1914_v32 }
0x1bb3   :  { %4960 = vmatpush3.bf16.msra.mxu0 %v5723_v56  ;;  %4491 = vmatprep.mubr.msk.f32.mxu0 %vm5303_vm0, %v5304_v6 }
0x1bb4   :  { %4961 = vmatprep.subr.bf16.mxu0 %v5302_v3 }
0x1bb7   :  { %4963 = vmatpush3.bf16.msra.mxu0 %v5729_v58 }
0x1bb8   :  { %4964 = vmatprep.subr.bf16.mxu0 %v5302_v3 }
0x1c85   :  { %v2057_v35 = vpop.f32.mrb[18].mxu0 }
0x1c86   :  { %v2058_v36 = vadd.f32 %v2057_v35, %v1984_v12  ;;  %v4482_v38 = vpop.f32.mrb[19].mxu0 }
0x1c88   :  { %v2061_v39 = vadd.f32 %v5706_v37, %v2058_v36 }
0x1c8a   :  { %5237 = vtanh.f32 %v2061_v39  ;;  %v3905_v41 = vmul.f32 -1.442695, %v2061_v39 }
0x1c8c   :  { %5239 = vpow2.f32 %v3905_v41 }
0x1c94   :  { %v5238_v40 = vpop.eup %5237 }
0x1c95   :  { %2071 = vrot.lane.b32.xlu0 %v5238_v40, %s5305_s23 }
0x1c96   :  { %v5240_v42 = vpop.eup %5239 }
0x1c97   :  { %v2065_v43 = vadd.f32 1.0, %v5240_v42 }
0x1c99   :  { %5241 = vrcp.f32 %v2065_v43 }
0x1ca3   :  { %v5242_v44 = vpop.eup %5241 }
0x1ca4   :  { %v2069_v47 = vmul.f32 %v5242_v44, %v5711_v51 }
0x1d07   :  { %v2072_v45 = vpop.permute.xlu0 %2071 }
0x1d08   :  { %v2074_v46 = vmul.f32 %v5242_v44, %v2072_v45 }
0x1d0a   :  { %2076 = vrot.lane.b32.xlu1 %v2074_v46, %s5306_s4 }
0x1d7c   :  { %v2077_v48 = vpop.permute.xlu1 %2076 }
0x1d7d   :  { %v5802_v49 = vadd.f32 %v2077_v48, %v2069_v47 }
0x1d7f   :  { %5243 = vtanh.f32 %v5802_v49 }
0x1d89   :  { %v5244_v50 = vpop.eup %5243 }
0x1d8a   :  { %2082 = vrot.lane.b32.xlu0 %v5244_v50, %s5305_s23 }
0x1dfc   :  { %v2083_v52 = vpop.permute.xlu0 %2082 }
0x1dfd   :  { %v2085_v14 = vmul.f32 %v5242_v44, %v2083_v52 }
0x1dff   :  { %2087 = vrot.lane.b32.xlu1 %v2085_v14, %s5306_s4 }
0x1e71   :  { %v2088_v54 = vpop.permute.xlu1 %2087 }
0x1e72   :  { %4492 = vmatmul.mubr.msk.f32.vlgmr.msra.gmra.mrb[20].mxu0 %vm81_vm2, %v2088_v54  ;;  %4538 = vmatmul.mubr.msk.f32.vlgmr.msra.gmra.mrb[26].mxu1 %vm81_vm2, %v2088_v54 }
0x1e73   :  { %4966 = vmatpush3.bf16.msra.mxu0 %v5583_v53  ;;  %4526 = vmatprep.mubr.msk.f32.mxu0 %vm5303_vm0, %v5304_v6 }
0x1e74   :  { %4967 = vmatprep.subr.bf16.mxu0 %v5302_v3  ;;  %4996 = vmatpush3.bf16.msra.mxu1 %v5693_v33 }
0x1e75   :  { %4544 = vmatprep.mubr.msk.f32.mxu1 %vm5303_vm0, %v5304_v6  ;;  %4997 = vmatprep.subr.bf16.mxu1 %v5302_v3 }
0x1e77   :  { %4969 = vmatpush3.bf16.msra.mxu0 %v5589_v55 }
0x1e78   :  { %4970 = vmatprep.subr.bf16.mxu0 %v5302_v3 }
0x1e7b   :  { %4972 = vmatpush3.bf16.msra.mxu0 %v5600_v61 }
0x1e7c   :  { %4973 = vmatprep.subr.bf16.mxu0 %v5302_v3 }
0x1e7f   :  { %4975 = vmatpush3.bf16.msra.mxu0 %v5611_v0 }
0x1e80   :  { %4976 = vmatprep.subr.bf16.mxu0 %v5302_v3 }
0x1e83   :  { %4978 = vmatpush3.bf16.msra.mxu0 %v5620_v5 }
0x1e84   :  { %4979 = vmatprep.subr.bf16.mxu0 %v5302_v3 }
0x1e87   :  { %4981 = vmatpush3.bf16.msra.mxu0 %v5630_v11 }
0x1e88   :  { %4982 = vmatprep.subr.bf16.mxu0 %v5302_v3 }
0x1e8b   :  { %4984 = vmatpush3.bf16.msra.mxu0 %v5640_v15 }
0x1e8c   :  { %4985 = vmatprep.subr.bf16.mxu0 %v5302_v3 }
0x1e8f   :  { %4987 = vmatpush3.bf16.msra.mxu0 %v5650_v18 }
0x1e90   :  { %5027 = vmatprep.subr.bf16.mxu0 %v5302_v3 }
0x1f45   :  { %v2157_v51 = vpop.f32.mrb[20].mxu0  ;;  %v2323_v57 = vpop.f32.mrb[26].mxu1 }
0x1f46   :  { %v2158_v59 = vadd.f32 %v5765_v7, %v2157_v51  ;;  %v4493_v60 = vpop.f32.mrb[21].mxu0  ;;  %v4539_v62 = vpop.f32.mrb[27].mxu1 }
0x1f47   :  { %v3918_v60 = vld [vmem:[%s6116_s11 + $0x6] sm:$0x3]  ;;  %v2520_v62 = vstv %s2517_s25  ;;  %s3539_s25 = ssub.f32 1.0, %s3534_s24 }
0x1f48   :  { %3907 = vst [vmem:[%s6117_s12 + $0x4] sm:$0x3] %v2158_v59  ;;  %v2163_v63 = vsel %vm1489_vm3, %v2158_v59, -1e+30 }
0x1f49   :  { %v2164_v1 = vsel %vm1824_vm4, %v2163_v63, -inf }
0x1f4a   :  { %2165 = vmax.xlane.f32.xlu0 %v2164_v1 }
0x1fd7   :  { %v2166_v8 = vpop.xlane.xlu0 %2165 }
0x1fd8   :  { %vm2167_vm7 = vcmp.eq.f32.partialorder %v2163_v63, %v2166_v8  ;;  %v2523_v63 = vstv %s2522_s26  ;;  %v2521_v8 = vmul.f32 %v3918_v60, %v2520_v62 }
0x1fd9   :  { %v2168_v12 = vsel %vm2167_vm7, %v5776_v21, 128.0 }
0x1fda   :  { %v2169_v13 = vsel %vm1824_vm4, %v2168_v12, inf }
0x1fdb   :  { %2170 = vmin.xlane.f32.xlu1 %v2169_v13 }
0x2068   :  { %v2171_v20 = vpop.xlane.xlu1 %2170 }
0x2069   :  { %vm2172_vm8 = vcmp.eq.f32.partialorder %v5776_v21, %v2171_v20 }
0x206a   :  { %v3908_v4 = vsel %vm2172_vm8, 1.0, %v5304_v6 }
0x206b   :  { %v2185_v23 = vmul.f32 %v3908_v4, %v2184_v19 }
0x206d   :  { %v2186_v24 = vadd.f32 %v2185_v23, %v2182_v22 }
0x206f   :  { %4527 = vmatmul.mubr.f32.vlgmr.msra.gmra.mrb[22].mxu0 %v2186_v24 }
0x2070   :  { %5029 = vmatpush3.bf16.msra.mxu0 %v5670_v10  ;;  %4601 = vmatprep.mubr.msk.f32.mxu0 %vm5303_vm0, %v5304_v6 }
0x2071   :  { %5030 = vmatprep.subr.bf16.mxu0 %v5302_v3 }
0x2074   :  { %5032 = vmatpush3.bf16.msra.mxu0 %v5676_v26 }
0x2075   :  { %5033 = vmatprep.subr.bf16.mxu0 %v5302_v3 }
0x2142   :  { %v2253_v25 = vpop.f32.mrb[22].mxu0 }
0x2143   :  { %v4528_v27 = vpop.f32.mrb[23].mxu0  ;;  %4545 = vmatmul.mubr.msk.f32.vlgmr.msra.gmra.mrb[28].mxu1 %vm155_vm1, %v2253_v25 }
0x2144   :  { %4999 = vmatpush3.bf16.msra.mxu1 %v5723_v56  ;;  %4555 = vmatprep.mubr.msk.f32.mxu1 %vm5303_vm0, %v5304_v6 }
0x2145   :  { %5000 = vmatprep.subr.bf16.mxu1 %v5302_v3 }
0x2148   :  { %5002 = vmatpush3.bf16.msra.mxu1 %v5729_v58 }
0x2149   :  { %5003 = vmatprep.subr.bf16.mxu1 %v5302_v3 }
0x2216   :  { %v2396_v28 = vpop.f32.mrb[28].mxu1 }
0x2217   :  { %v2397_v29 = vadd.f32 %v2396_v28, %v2323_v57  ;;  %v4546_v9 = vpop.f32.mrb[29].mxu1 }
0x2219   :  { %v2400_v30 = vadd.f32 %v5706_v37, %v2397_v29 }
0x221b   :  { %5245 = vtanh.f32 %v2400_v30  ;;  %v3913_v32 = vmul.f32 -1.442695, %v2400_v30 }
0x221d   :  { %5247 = vpow2.f32 %v3913_v32 }
0x2225   :  { %v5246_v31 = vpop.eup %5245 }
0x2226   :  { %2410 = vrot.lane.b32.xlu0 %v5246_v31, %s5305_s23 }
0x2227   :  { %v5248_v34 = vpop.eup %5247 }
0x2228   :  { %v2404_v35 = vadd.f32 1.0, %v5248_v34 }
0x222a   :  { %5249 = vrcp.f32 %v2404_v35 }
0x2234   :  { %v5250_v36 = vpop.eup %5249 }
0x2235   :  { %v2408_v40 = vmul.f32 %v5250_v36, %v5802_v49 }
0x2298   :  { %v2411_v38 = vpop.permute.xlu0 %2410 }
0x2299   :  { %v2413_v39 = vmul.f32 %v5250_v36, %v2411_v38 }
0x229b   :  { %2415 = vrot.lane.b32.xlu1 %v2413_v39, %s5306_s4 }
0x230d   :  { %v2416_v41 = vpop.permute.xlu1 %2415 }
0x230e   :  { %v5862_v42 = vadd.f32 %v2416_v41, %v2408_v40 }
0x2310   :  { %5251 = vtanh.f32 %v5862_v42 }
0x231a   :  { %v5252_v43 = vpop.eup %5251 }
0x231b   :  { %2421 = vrot.lane.b32.xlu0 %v5252_v43, %s5305_s23 }
0x238d   :  { %v2422_v44 = vpop.permute.xlu0 %2421 }
0x238e   :  { %v2424_v45 = vmul.f32 %v5250_v36, %v2422_v44 }
0x2390   :  { %2426 = vrot.lane.b32.xlu1 %v2424_v45, %s5306_s4 }
0x2402   :  { %v2427_v46 = vpop.permute.xlu1 %2426 }
0x2403   :  { %4556 = vmatmul.mubr.msk.f32.vlgmr.msra.gmra.mrb[30].mxu1 %vm81_vm2, %v2427_v46  ;;  %4602 = vmatmul.mubr.msk.f32.vlgmr.msra.gmra.mrb[24].mxu0 %vm81_vm2, %v2427_v46 }
0x2404   :  { %5005 = vmatpush3.bf16.msra.mxu1 %v5583_v53  ;;  %4590 = vmatprep.mubr.msk.f32.mxu1 %vm5303_vm0, %v5304_v6 }
0x2405   :  { %5006 = vmatprep.subr.bf16.mxu1 %v5302_v3  ;;  %5035 = vmatpush3.bf16.msra.mxu0 %v5693_v33 }
0x2406   :  { %4608 = vmatprep.mubr.msk.f32.mxu0 %vm5303_vm0, %v5304_v6  ;;  %5036 = vmatprep.subr.bf16.mxu0 %v5302_v3 }
0x2408   :  { %5008 = vmatpush3.bf16.msra.mxu1 %v5589_v55 }
0x2409   :  { %5009 = vmatprep.subr.bf16.mxu1 %v5302_v3 }
0x240c   :  { %5011 = vmatpush3.bf16.msra.mxu1 %v5600_v61 }
0x240d   :  { %5012 = vmatprep.subr.bf16.mxu1 %v5302_v3 }
0x2410   :  { %5014 = vmatpush3.bf16.msra.mxu1 %v5611_v0 }
0x2411   :  { %5015 = vmatprep.subr.bf16.mxu1 %v5302_v3 }
0x2414   :  { %5017 = vmatpush3.bf16.msra.mxu1 %v5620_v5 }
0x2415   :  { %5018 = vmatprep.subr.bf16.mxu1 %v5302_v3 }
0x2418   :  { %5020 = vmatpush3.bf16.msra.mxu1 %v5630_v11 }
0x2419   :  { %5021 = vmatprep.subr.bf16.mxu1 %v5302_v3 }
0x241c   :  { %5023 = vmatpush3.bf16.msra.mxu1 %v5640_v15 }
0x241d   :  { %5024 = vmatprep.subr.bf16.mxu1 %v5302_v3 }
0x2420   :  { %5026 = vmatpush3.bf16.msra.mxu1 %v5650_v18 }
0x2421   :  { %5066 = vmatprep.subr.bf16.mxu1 %v5302_v3 }
0x24d6   :  { %v2496_v47 = vpop.f32.mrb[30].mxu1  ;;  %v2662_v48 = vpop.f32.mrb[24].mxu0 }
0x24d7   :  { %v2497_v49 = vadd.f32 %v5765_v7, %v2496_v47  ;;  %v4557_v50 = vpop.f32.mrb[31].mxu1  ;;  %v4603_v52 = vpop.f32.mrb[25].mxu0 }
0x24d8   :  { %v3926_v50 = vld [vmem:[%s6116_s11 + $0x8] sm:$0x3]  ;;  %v2859_v52 = vstv %s2856_s30 }
0x24d9   :  { %3915 = vst [vmem:[%s6117_s12 + $0x6] sm:$0x3] %v2497_v49  ;;  %v2502_v14 = vsel %vm1489_vm3, %v2497_v49, -1e+30 }
0x24da   :  { %v2503_v54 = vsel %vm1824_vm4, %v2502_v14, -inf }
0x24db   :  { %2504 = vmax.xlane.f32.xlu0 %v2503_v54 }
0x2568   :  { %v2505_v51 = vpop.xlane.xlu0 %2504 }
0x2569   :  { %vm2506_vm9 = vcmp.eq.f32.partialorder %v2502_v14, %v2505_v51  ;;  %v2862_v14 = vstv %s2861_s13  ;;  %v2860_v51 = vmul.f32 %v3926_v50, %v2859_v52 }
0x256a   :  { %v2507_v57 = vsel %vm2506_vm9, %v5776_v21, 128.0 }
0x256b   :  { %v2508_v59 = vsel %vm1824_vm4, %v2507_v57, inf }
0x256c   :  { %2509 = vmin.xlane.f32.xlu1 %v2508_v59 }
0x25f9   :  { %v2510_v1 = vpop.xlane.xlu1 %2509 }
0x25fa   :  { %vm2511_vm10 = vcmp.eq.f32.partialorder %v5776_v21, %v2510_v1 }
0x25fb   :  { %v3916_v12 = vsel %vm2511_vm10, 1.0, %v5304_v6 }
0x25fc   :  { %v2524_v13 = vmul.f32 %v3916_v12, %v2523_v63 }
0x25fe   :  { %v2525_v16 = vadd.f32 %v2524_v13, %v2521_v8 }
0x2600   :  { %4591 = vmatmul.mubr.f32.vlgmr.msra.gmra.mrb[32].mxu1 %v2525_v16 }
0x2601   :  { %5068 = vmatpush3.bf16.msra.mxu1 %v5670_v10  ;;  %4665 = vmatprep.mubr.msk.f32.mxu1 %vm5303_vm0, %v5304_v6 }
0x2602   :  { %5069 = vmatprep.subr.bf16.mxu1 %v5302_v3 }
0x2605   :  { %5071 = vmatpush3.bf16.msra.mxu1 %v5676_v26 }
0x2606   :  { %5072 = vmatprep.subr.bf16.mxu1 %v5302_v3 }
0x26d3   :  { %v2592_v17 = vpop.f32.mrb[32].mxu1 }
0x26d4   :  { %v4592_v19 = vpop.f32.mrb[33].mxu1  ;;  %4609 = vmatmul.mubr.msk.f32.vlgmr.msra.gmra.mrb[26].mxu0 %vm155_vm1, %v2592_v17 }
0x26d5   :  { %5038 = vmatpush3.bf16.msra.mxu0 %v5723_v56  ;;  %4619 = vmatprep.mubr.msk.f32.mxu0 %vm5303_vm0, %v5304_v6 }
0x26d6   :  { %5039 = vmatprep.subr.bf16.mxu0 %v5302_v3 }
0x26d9   :  { %5041 = vmatpush3.bf16.msra.mxu0 %v5729_v58 }
0x26da   :  { %5042 = vmatprep.subr.bf16.mxu0 %v5302_v3 }
0x27a7   :  { %v2735_v20 = vpop.f32.mrb[26].mxu0 }
0x27a8   :  { %v2736_v22 = vadd.f32 %v2735_v20, %v2662_v48  ;;  %v4610_v4 = vpop.f32.mrb[27].mxu0 }
0x27aa   :  { %v2739_v23 = vadd.f32 %v5706_v37, %v2736_v22 }
0x27ac   :  { %5253 = vtanh.f32 %v2739_v23  ;;  %v3921_v25 = vmul.f32 -1.442695, %v2739_v23 }
0x27ae   :  { %5255 = vpow2.f32 %v3921_v25 }
0x27b6   :  { %v5254_v24 = vpop.eup %5253 }
0x27b7   :  { %2749 = vrot.lane.b32.xlu0 %v5254_v24, %s5305_s23 }
0x27b8   :  { %v5256_v27 = vpop.eup %5255 }
0x27b9   :  { %v2743_v28 = vadd.f32 1.0, %v5256_v27 }
0x27bb   :  { %5257 = vrcp.f32 %v2743_v28 }
0x27c5   :  { %v5258_v29 = vpop.eup %5257 }
0x27c6   :  { %v2747_v31 = vmul.f32 %v5258_v29, %v5862_v42 }
0x2829   :  { %v2750_v9 = vpop.permute.xlu0 %2749 }
0x282a   :  { %v2752_v30 = vmul.f32 %v5258_v29, %v2750_v9 }
0x282c   :  { %2754 = vrot.lane.b32.xlu1 %v2752_v30, %s5306_s4 }
0x289e   :  { %v2755_v32 = vpop.permute.xlu1 %2754 }
0x289f   :  { %v5922_v34 = vadd.f32 %v2755_v32, %v2747_v31 }
0x28a1   :  { %5259 = vtanh.f32 %v5922_v34 }
0x28ab   :  { %v5260_v35 = vpop.eup %5259 }
0x28ac   :  { %2760 = vrot.lane.b32.xlu0 %v5260_v35, %s5305_s23 }
0x291e   :  { %v2761_v36 = vpop.permute.xlu0 %2760 }
0x291f   :  { %v2763_v38 = vmul.f32 %v5258_v29, %v2761_v36 }
0x2921   :  { %2765 = vrot.lane.b32.xlu1 %v2763_v38, %s5306_s4 }
0x2993   :  { %v2766_v39 = vpop.permute.xlu1 %2765 }
0x2994   :  { %4620 = vmatmul.mubr.msk.f32.vlgmr.msra.gmra.mrb[28].mxu0 %vm81_vm2, %v2766_v39  ;;  %4666 = vmatmul.mubr.msk.f32.vlgmr.msra.gmra.mrb[34].mxu1 %vm81_vm2, %v2766_v39 }
0x2995   :  { %5044 = vmatpush3.bf16.msra.mxu0 %v5583_v53  ;;  %4654 = vmatprep.mubr.msk.f32.mxu0 %vm5303_vm0, %v5304_v6 }
0x2996   :  { %5045 = vmatprep.subr.bf16.mxu0 %v5302_v3  ;;  %5074 = vmatpush3.bf16.msra.mxu1 %v5693_v33 }
0x2997   :  { %4672 = vmatprep.mubr.msk.f32.mxu1 %vm5303_vm0, %v5304_v6  ;;  %5075 = vmatprep.subr.bf16.mxu1 %v5302_v3 }
0x2999   :  { %5047 = vmatpush3.bf16.msra.mxu0 %v5589_v55 }
0x299a   :  { %5048 = vmatprep.subr.bf16.mxu0 %v5302_v3 }
0x299d   :  { %5050 = vmatpush3.bf16.msra.mxu0 %v5600_v61 }
0x299e   :  { %5051 = vmatprep.subr.bf16.mxu0 %v5302_v3 }
0x29a1   :  { %5053 = vmatpush3.bf16.msra.mxu0 %v5611_v0 }
0x29a2   :  { %5054 = vmatprep.subr.bf16.mxu0 %v5302_v3 }
0x29a5   :  { %5056 = vmatpush3.bf16.msra.mxu0 %v5620_v5 }
0x29a6   :  { %5057 = vmatprep.subr.bf16.mxu0 %v5302_v3 }
0x29a9   :  { %5059 = vmatpush3.bf16.msra.mxu0 %v5630_v11 }
0x29aa   :  { %5060 = vmatprep.subr.bf16.mxu0 %v5302_v3 }
0x29ad   :  { %5062 = vmatpush3.bf16.msra.mxu0 %v5640_v15 }
0x29ae   :  { %5063 = vmatprep.subr.bf16.mxu0 %v5302_v3 }
0x29b1   :  { %5065 = vmatpush3.bf16.msra.mxu0 %v5650_v18 }
0x29b2   :  { %5105 = vmatprep.subr.bf16.mxu0 %v5302_v3 }
0x2a67   :  { %v2835_v40 = vpop.f32.mrb[28].mxu0  ;;  %v3001_v41 = vpop.f32.mrb[34].mxu1 }
0x2a68   :  { %v2836_v42 = vadd.f32 %v5765_v7, %v2835_v40  ;;  %v4621_v43 = vpop.f32.mrb[29].mxu0  ;;  %v4667_v44 = vpop.f32.mrb[35].mxu1 }
0x2a69   :  { %v3934_v43 = vld [vmem:[%s6116_s11 + $0xa] sm:$0x3]  ;;  %v3198_v44 = vstv %s3195_s1 }
0x2a6a   :  { %3923 = vst [vmem:[%s6117_s12 + $0x8] sm:$0x3] %v2836_v42  ;;  %v2841_v45 = vsel %vm1489_vm3, %v2836_v42, -1e+30 }
0x2a6b   :  { %v2842_v46 = vsel %vm1824_vm4, %v2841_v45, -inf }
0x2a6c   :  { %2843 = vmax.xlane.f32.xlu0 %v2842_v46 }
0x2af9   :  { %v2844_v47 = vpop.xlane.xlu0 %2843 }
0x2afa   :  { %vm2845_vm11 = vcmp.eq.f32.partialorder %v2841_v45, %v2844_v47  ;;  %v3201_v45 = vstv %s3200_s19  ;;  %v3199_v47 = vmul.f32 %v3934_v43, %v3198_v44 }
0x2afb   :  { %v2846_v48 = vsel %vm2845_vm11, %v5776_v21, 128.0 }
0x2afc   :  { %v2847_v49 = vsel %vm1824_vm4, %v2846_v48, inf }
0x2afd   :  { %2848 = vmin.xlane.f32.xlu1 %v2847_v49 }
0x2b8a   :  { %v2849_v54 = vpop.xlane.xlu1 %2848 }
0x2b8b   :  { %vm2850_vm12 = vcmp.eq.f32.partialorder %v5776_v21, %v2849_v54 }
0x2b8c   :  { %v3924_v57 = vsel %vm2850_vm12, 1.0, %v5304_v6 }
0x2b8d   :  { %v2863_v59 = vmul.f32 %v3924_v57, %v2862_v14 }
0x2b8f   :  { %v2864_v60 = vadd.f32 %v2863_v59, %v2860_v51 }
0x2b91   :  { %4655 = vmatmul.mubr.f32.vlgmr.msra.gmra.mrb[30].mxu0 %v2864_v60 }
0x2b92   :  { %5107 = vmatpush3.bf16.msra.mxu0 %v5670_v10  ;;  %4729 = vmatprep.mubr.msk.f32.mxu0 %vm5303_vm0, %v5304_v6 }
0x2b93   :  { %5108 = vmatprep.subr.bf16.mxu0 %v5302_v3 }
0x2b96   :  { %5110 = vmatpush3.bf16.msra.mxu0 %v5676_v26 }
0x2b97   :  { %5111 = vmatprep.subr.bf16.mxu0 %v5302_v3 }
0x2c64   :  { %v2931_v62 = vpop.f32.mrb[30].mxu0 }
0x2c65   :  { %v4656_v63 = vpop.f32.mrb[31].mxu0  ;;  %4673 = vmatmul.mubr.msk.f32.vlgmr.msra.gmra.mrb[36].mxu1 %vm155_vm1, %v2931_v62 }
0x2c66   :  { %5077 = vmatpush3.bf16.msra.mxu1 %v5723_v56  ;;  %4683 = vmatprep.mubr.msk.f32.mxu1 %vm5303_vm0, %v5304_v6 }
0x2c67   :  { %5078 = vmatprep.subr.bf16.mxu1 %v5302_v3 }
0x2c6a   :  { %5080 = vmatpush3.bf16.msra.mxu1 %v5729_v58 }
0x2c6b   :  { %5081 = vmatprep.subr.bf16.mxu1 %v5302_v3 }
0x2d38   :  { %v3074_v1 = vpop.f32.mrb[36].mxu1 }
0x2d39   :  { %v3075_v8 = vadd.f32 %v3074_v1, %v3001_v41  ;;  %v4674_v12 = vpop.f32.mrb[37].mxu1 }
0x2d3b   :  { %v3078_v13 = vadd.f32 %v5706_v37, %v3075_v8 }
0x2d3d   :  { %5261 = vtanh.f32 %v3078_v13  ;;  %v3929_v17 = vmul.f32 -1.442695, %v3078_v13 }
0x2d3f   :  { %5263 = vpow2.f32 %v3929_v17 }
0x2d47   :  { %v5262_v16 = vpop.eup %5261 }
0x2d48   :  { %3088 = vrot.lane.b32.xlu0 %v5262_v16, %s5305_s23 }
0x2d49   :  { %v5264_v19 = vpop.eup %5263 }
0x2d4a   :  { %v3082_v20 = vadd.f32 1.0, %v5264_v19 }
0x2d4c   :  { %5265 = vrcp.f32 %v3082_v20 }
0x2d56   :  { %v5266_v22 = vpop.eup %5265 }
0x2d57   :  { %v3086_v24 = vmul.f32 %v5266_v22, %v5922_v34 }
0x2dba   :  { %v3089_v4 = vpop.permute.xlu0 %3088 }
0x2dbb   :  { %v3091_v23 = vmul.f32 %v5266_v22, %v3089_v4  ;;  %v3540_v4 = vstv %s3539_s25 }
0x2dbd   :  { %3093 = vrot.lane.b32.xlu1 %v3091_v23, %s5306_s4 }
0x2e2f   :  { %v3094_v25 = vpop.permute.xlu1 %3093 }
0x2e30   :  { %v5982_v27 = vadd.f32 %v3094_v25, %v3086_v24 }
0x2e32   :  { %5267 = vtanh.f32 %v5982_v27 }
0x2e3c   :  { %v5268_v28 = vpop.eup %5267 }
0x2e3d   :  { %3099 = vrot.lane.b32.xlu0 %v5268_v28, %s5305_s23 }
0x2eaf   :  { %v3100_v29 = vpop.permute.xlu0 %3099 }
0x2eb0   :  { %v3102_v9 = vmul.f32 %v5266_v22, %v3100_v29 }
0x2eb2   :  { %3104 = vrot.lane.b32.xlu1 %v3102_v9, %s5306_s4 }
0x2f24   :  { %v3105_v30 = vpop.permute.xlu1 %3104 }
0x2f25   :  { %4684 = vmatmul.mubr.msk.f32.vlgmr.msra.gmra.mrb[38].mxu1 %vm81_vm2, %v3105_v30  ;;  %4730 = vmatmul.mubr.msk.f32.vlgmr.msra.gmra.mrb[32].mxu0 %vm81_vm2, %v3105_v30 }
0x2f26   :  { %5083 = vmatpush3.bf16.msra.mxu1 %v5583_v53  ;;  %4718 = vmatprep.mubr.msk.f32.mxu1 %vm5303_vm0, %v5304_v6 }
0x2f27   :  { %5084 = vmatprep.subr.bf16.mxu1 %v5302_v3  ;;  %5113 = vmatpush3.bf16.msra.mxu0 %v5693_v33 }
0x2f28   :  { %4736 = vmatprep.mubr.msk.f32.mxu0 %vm5303_vm0, %v5304_v6  ;;  %5114 = vmatprep.subr.bf16.mxu0 %v5302_v3 }
0x2f2a   :  { %5086 = vmatpush3.bf16.msra.mxu1 %v5589_v55 }
0x2f2b   :  { %5087 = vmatprep.subr.bf16.mxu1 %v5302_v3 }
0x2f2e   :  { %5089 = vmatpush3.bf16.msra.mxu1 %v5600_v61 }
0x2f2f   :  { %5090 = vmatprep.subr.bf16.mxu1 %v5302_v3 }
0x2f32   :  { %5092 = vmatpush3.bf16.msra.mxu1 %v5611_v0 }
0x2f33   :  { %5093 = vmatprep.subr.bf16.mxu1 %v5302_v3 }
0x2f36   :  { %5095 = vmatpush3.bf16.msra.mxu1 %v5620_v5 }
0x2f37   :  { %5096 = vmatprep.subr.bf16.mxu1 %v5302_v3 }
0x2f3a   :  { %5098 = vmatpush3.bf16.msra.mxu1 %v5630_v11 }
0x2f3b   :  { %5099 = vmatprep.subr.bf16.mxu1 %v5302_v3 }
0x2f3e   :  { %5101 = vmatpush3.bf16.msra.mxu1 %v5640_v15 }
0x2f3f   :  { %5102 = vmatprep.subr.bf16.mxu1 %v5302_v3 }
0x2f42   :  { %5104 = vmatpush3.bf16.msra.mxu1 %v5650_v18 }
0x2f43   :  { %5144 = vmatprep.subr.bf16.mxu1 %v5302_v3 }
0x2ff8   :  { %v3174_v31 = vpop.f32.mrb[38].mxu1  ;;  %v3340_v32 = vpop.f32.mrb[32].mxu0 }
0x2ff9   :  { %v3175_v34 = vadd.f32 %v5765_v7, %v3174_v31  ;;  %v4685_v35 = vpop.f32.mrb[39].mxu1  ;;  %v4731_v36 = vpop.f32.mrb[33].mxu0 }
0x2ffb   :  { %3931 = vst [vmem:[%s6117_s12 + $0xa] sm:$0x3] %v3175_v34  ;;  %v3180_v38 = vsel %vm1489_vm3, %v3175_v34, -1e+30 }
0x2ffc   :  { %v3181_v39 = vsel %vm1824_vm4, %v3180_v38, -inf }
0x2ffd   :  { %3182 = vmax.xlane.f32.xlu0 %v3181_v39 }
0x308a   :  { %v3183_v40 = vpop.xlane.xlu0 %3182 }
0x308b   :  { %vm3184_vm13 = vcmp.eq.f32.partialorder %v3180_v38, %v3183_v40 }
0x308c   :  { %v3185_v41 = vsel %vm3184_vm13, %v5776_v21, 128.0 }
0x308d   :  { %v3186_v42 = vsel %vm1824_vm4, %v3185_v41, inf }
0x308e   :  { %3187 = vmin.xlane.f32.xlu1 %v3186_v42 }
0x311b   :  { %v3188_v46 = vpop.xlane.xlu1 %3187 }
0x311c   :  { %vm3189_vm14 = vcmp.eq.f32.partialorder %v5776_v21, %v3188_v46 }
0x311d   :  { %v3932_v48 = vsel %vm3189_vm14, 1.0, %v5304_v6 }
0x311e   :  { %v3202_v49 = vmul.f32 %v3932_v48, %v3201_v45 }
0x3120   :  { %v3203_v50 = vadd.f32 %v3202_v49, %v3199_v47  ;;  %v5286_v47 = vld [vmem:[%s6115_s10] ss:$0 sm:$0xff] }
0x3122   :  { %4719 = vmatmul.mubr.f32.vlgmr.msra.gmra.mrb[40].mxu1 %v3203_v50 }
0x3123   :  { %5146 = vmatpush3.bf16.msra.mxu1 %v5670_v10  ;;  %4793 = vmatprep.mubr.msk.f32.mxu1 %vm5303_vm0, %v5304_v6 }
0x3124   :  { %5147 = vmatprep.subr.bf16.mxu1 %v5302_v3 }
0x3127   :  { %5149 = vmatpush3.bf16.msra.mxu1 %v5676_v26 }
0x3128   :  { %5150 = vmatprep.subr.bf16.mxu1 %v5302_v3 }
0x31f5   :  { %v3270_v52 = vpop.f32.mrb[40].mxu1 }
0x31f6   :  { %v4720_v14 = vpop.f32.mrb[41].mxu1  ;;  %4737 = vmatmul.mubr.msk.f32.vlgmr.msra.gmra.mrb[34].mxu0 %vm155_vm1, %v3270_v52 }
0x31f7   :  { %5116 = vmatpush3.bf16.msra.mxu0 %v5723_v56  ;;  %4747 = vmatprep.mubr.msk.f32.mxu0 %vm5303_vm0, %v5304_v6 }
0x31f8   :  { %5117 = vmatprep.subr.bf16.mxu0 %v5302_v3 }
0x31fb   :  { %5119 = vmatpush3.bf16.msra.mxu0 %v5729_v58 }
0x31fc   :  { %5120 = vmatprep.subr.bf16.mxu0 %v5302_v3 }
0x32c9   :  { %v3413_v10 = vpop.f32.mrb[34].mxu0 }
0x32ca   :  { %v3414_v54 = vadd.f32 %v3413_v10, %v3340_v32  ;;  %v4738_v26 = vpop.f32.mrb[35].mxu0  ;;  %v5285_v32 = vld [vmem:[%s6113_s8] ss:$0 sm:$0xff] }
0x32cc   :  { %v3417_v51 = vadd.f32 %v5706_v37, %v3414_v54 }
0x32ce   :  { %5269 = vtanh.f32 %v3417_v51  ;;  %v3937_v59 = vmul.f32 -1.442695, %v3417_v51 }
0x32d0   :  { %5271 = vpow2.f32 %v3937_v59 }
0x32d8   :  { %v5270_v57 = vpop.eup %5269 }
0x32d9   :  { %3427 = vrot.lane.b32.xlu0 %v5270_v57, %s5305_s23 }
0x32da   :  { %v5272_v60 = vpop.eup %5271 }
0x32db   :  { %v3421_v62 = vadd.f32 1.0, %v5272_v60 }
0x32dd   :  { %5273 = vrcp.f32 %v3421_v62 }
0x32e7   :  { %v5274_v63 = vpop.eup %5273 }
0x32e8   :  { %v3425_v12 = vmul.f32 %v5274_v63, %v5982_v27 }
0x334b   :  { %v3428_v1 = vpop.permute.xlu0 %3427 }
0x334c   :  { %v3430_v8 = vmul.f32 %v5274_v63, %v3428_v1 }
0x334e   :  { %3432 = vrot.lane.b32.xlu1 %v3430_v8, %s5306_s4 }
0x33c0   :  { %v3433_v13 = vpop.permute.xlu1 %3432 }
0x33c1   :  { %v6042_v16 = vadd.f32 %v3433_v13, %v3425_v12 }
0x33c3   :  { %5275 = vtanh.f32 %v6042_v16 }
0x33cd   :  { %v5276_v37 = vpop.eup %5275 }
0x33ce   :  { %3438 = vrot.lane.b32.xlu0 %v5276_v37, %s5305_s23 }
0x3440   :  { %v3439_v17 = vpop.permute.xlu0 %3438 }
0x3441   :  { %v3441_v19 = vmul.f32 %v5274_v63, %v3439_v17 }
0x3443   :  { %3443 = vrot.lane.b32.xlu1 %v3441_v19, %s5306_s4 }
0x34b5   :  { %v3444_v20 = vpop.permute.xlu1 %3443 }
0x34b6   :  { %4748 = vmatmul.mubr.msk.f32.vlgmr.msra.gmra.mrb[36].mxu0 %vm81_vm2, %v3444_v20  ;;  %4794 = vmatmul.mubr.msk.f32.vlgmr.msra.gmra.mrb[42].mxu1 %vm81_vm2, %v3444_v20 }
0x34b7   :  { %5122 = vmatpush3.bf16.msra.mxu0 %v5583_v53  ;;  %4782 = vmatprep.mubr.msk.f32.mxu0 %vm5303_vm0, %v5304_v6 }
0x34b8   :  { %5123 = vmatprep.subr.bf16.mxu0 %v5302_v3  ;;  %5152 = vmatpush3.bf16.msra.mxu1 %v5693_v33 }
0x34b9   :  { %4800 = vmatprep.mubr.msk.f32.mxu1 %vm5303_vm0, %v5304_v6  ;;  %5153 = vmatprep.subr.bf16.mxu1 %v5302_v3 }
0x34bb   :  { %5125 = vmatpush3.bf16.msra.mxu0 %v5589_v55 }
0x34bc   :  { %5126 = vmatprep.subr.bf16.mxu0 %v5302_v3 }
0x34bf   :  { %5128 = vmatpush3.bf16.msra.mxu0 %v5600_v61 }
0x34c0   :  { %5129 = vmatprep.subr.bf16.mxu0 %v5302_v3 }
0x34c3   :  { %5131 = vmatpush3.bf16.msra.mxu0 %v5611_v0 }
0x34c4   :  { %5132 = vmatprep.subr.bf16.mxu0 %v5302_v3 }
0x34c7   :  { %5134 = vmatpush3.bf16.msra.mxu0 %v5620_v5 }
0x34c8   :  { %5135 = vmatprep.subr.bf16.mxu0 %v5302_v3 }
0x34cb   :  { %5137 = vmatpush3.bf16.msra.mxu0 %v5630_v11 }
0x34cc   :  { %5138 = vmatprep.subr.bf16.mxu0 %v5302_v3 }
0x34cf   :  { %5140 = vmatpush3.bf16.msra.mxu0 %v5640_v15 }
0x34d0   :  { %5141 = vmatprep.subr.bf16.mxu0 %v5302_v3 }
0x34d3   :  { %5143 = vmatpush3.bf16.msra.mxu0 %v5650_v18 }
0x3589   :  { %v3513_v53 = vpop.f32.mrb[36].mxu0  ;;  %v3679_v55 = vpop.f32.mrb[42].mxu1 }
0x358a   :  { %v3514_v61 = vadd.f32 %v5765_v7, %v3513_v53  ;;  %v4749_v0 = vpop.f32.mrb[37].mxu0  ;;  %v4795_v33 = vpop.f32.mrb[43].mxu1  ;;  %v3537_v7 = vstv %s3534_s24 }
0x358b   :  { %v3538_v24 = vmul.f32 %v3942_v2, %v3537_v7 }
0x358c   :  { %3939 = vst [vmem:[%s6117_s12 + $0xc] sm:$0x3] %v3514_v61  ;;  %v3519_v5 = vsel %vm1489_vm3, %v3514_v61, -1e+30 }
0x358d   :  { %v3520_v11 = vsel %vm1824_vm4, %v3519_v5, -inf }
0x358e   :  { %3521 = vmax.xlane.f32.xlu0 %v3520_v11 }
0x361b   :  { %v3522_v15 = vpop.xlane.xlu0 %3521 }
0x361c   :  { %vm3523_vm15 = vcmp.eq.f32.partialorder %v3519_v5, %v3522_v15 }
0x361d   :  { %v3524_v18 = vsel %vm3523_vm15, %v5776_v21, 128.0 }
0x361e   :  { %v3525_v22 = vsel %vm1824_vm4, %v3524_v18, inf }
0x361f   :  { %3526 = vmin.xlane.f32.xlu1 %v3525_v22 }
0x36ac   :  { %v3527_v23 = vpop.xlane.xlu1 %3526 }
0x36ad   :  { %vm3528_vm3 = vcmp.eq.f32.partialorder %v5776_v21, %v3527_v23 }
0x36ae   :  { %v3940_v25 = vsel %vm3528_vm3, 1.0, %v5304_v6 }
0x36af   :  { %v3541_v27 = vmul.f32 %v3940_v25, %v3540_v4 }
0x36b1   :  { %v3542_v28 = vadd.f32 %v3541_v27, %v3538_v24 }
0x36b3   :  { %4783 = vmatmul.mubr.f32.vlgmr.msra.gmra.mrb[38].mxu0 %v3542_v28 }
0x3786   :  { %v3609_v29 = vpop.f32.mrb[38].mxu0 }
0x3787   :  { %v4784_v9 = vpop.f32.mrb[39].mxu0  ;;  %4801 = vmatmul.mubr.msk.f32.vlgmr.msra.gmra.mrb[44].mxu1 %vm155_vm1, %v3609_v29 }
0x3788   :  { %5155 = vmatpush3.bf16.msra.mxu1 %v5723_v56  ;;  %4811 = vmatprep.mubr.msk.f32.mxu1 %vm5303_vm0, %v5304_v6 }
0x3789   :  { %5156 = vmatprep.subr.bf16.mxu1 %v5302_v3 }
0x378c   :  { %5158 = vmatpush3.bf16.msra.mxu1 %v5729_v58 }
0x385a   :  { %v3752_v30 = vpop.f32.mrb[44].mxu1 }
0x385b   :  { %v3753_v21 = vadd.f32 %v3752_v30, %v3679_v55  ;;  %v4802_v31 = vpop.f32.mrb[45].mxu1 }
0x385d   :  { %v3756_v34 = vadd.f32 %v5285_v32, %v3753_v21 }
0x385f   :  { %5277 = vtanh.f32 %v3756_v34  ;;  %v3945_v56 = vmul.f32 -1.442695, %v3756_v34 }
0x3861   :  { %5279 = vpow2.f32 %v3945_v56 }
0x3869   :  { %v5278_v35 = vpop.eup %5277 }
0x386a   :  { %3766 = vrot.lane.b32.xlu0 %v5278_v35, %s5305_s23 }
0x386b   :  { %v5280_v36 = vpop.eup %5279 }
0x386c   :  { %v3760_v6 = vadd.f32 1.0, %v5280_v36 }
0x386e   :  { %5281 = vrcp.f32 %v3760_v6 }
0x3878   :  { %v5282_v3 = vpop.eup %5281 }
0x3879   :  { %v3764_v39 = vmul.f32 %v5282_v3, %v6042_v16 }
0x38dc   :  { %v3767_v38 = vpop.permute.xlu0 %3766 }
0x38dd   :  { %v3769_v58 = vmul.f32 %v5282_v3, %v3767_v38 }
0x38df   :  { %3771 = vrot.lane.b32.xlu1 %v3769_v58, %s5306_s4 }
0x3951   :  { %v3772_v40 = vpop.permute.xlu1 %3771 }
0x3952   :  { %v3774_v41 = vadd.f32 %v3772_v40, %v3764_v39 }
0x3954   :  { %5283 = vtanh.f32 %v3774_v41 }
0x395e   :  { %v5284_v42 = vpop.eup %5283 }
0x395f   :  { %3777 = vrot.lane.b32.xlu0 %v5284_v42, %s5305_s23 }
0x39d1   :  { %v3778_v43 = vpop.permute.xlu0 %3777 }
0x39d2   :  { %v3780_v44 = vmul.f32 %v5282_v3, %v3778_v43 }
0x39d4   :  { %3782 = vrot.lane.b32.xlu1 %v3780_v44, %s5306_s4 }
0x3a46   :  { %v3783_v45 = vpop.permute.xlu1 %3782 }
0x3a47   :  { %4812 = vmatmul.mubr.msk.f32.vlgmr.msra.gmra.mrb[46].mxu1 %vm81_vm2, %v3783_v45 }
0x3b1a   :  { %v3852_v46 = vpop.f32.mrb[46].mxu1 }
0x3b1b   :  { %v3853_v48 = vadd.f32 %v5286_v47, %v3852_v46  ;;  %v4813_v49 = vpop.f32.mrb[47].mxu1 }
0x3b1d   :  { %3947 = vst [vmem:[%s6117_s12 + $0xe] sm:$0x3] %v3853_v48 }

</bundles_post_ra>
